<compile_context>
chip_gen: v7x
topology: tpu7x:2x2x1
jax: 0.10.0
libtpu: 0.0.40
codegen_flags: <defaults>
</compile_context>

<pallas_src>
import functools

import jax
import jax.numpy as jnp
from jax.experimental import pallas as pl
from jax.experimental.pallas import tpu as pltpu


# --------------------------- tiling helpers ----------------------------------

def _round_up(x, m):
    return ((x + m - 1) // m) * m


def _row_tiling(R):
    """Pick a row tile tm (sublane dim) and padded row count Rp with Rp % tm == 0."""
    for tm in (256, 128):               # large tiles amortize the ~0.35us/grid-step overhead
        if R % tm == 0:
            return tm, R
    if R <= 256:                        # small problem: a single row block
        rp = _round_up(R, 8)
        return rp, rp
    rp = _round_up(R, 128)
    return 128, rp


def _col_tile(D_out):
    """Lane-dense output-feature tile: multiple of 128 if possible, else the full dim."""
    for tn in (512, 256, 128):
        if D_out % tn == 0:
            return tn
    return D_out


def _pad_rows(a, Rp):
    R = a.shape[0]
    if Rp == R:
        return a
    return jnp.pad(a, ((0, Rp - R), (0, 0)))


# ------------------------------ exact GELU ------------------------------------
# nn.GELU() default is the exact erf form. erf is built from an Abramowitz & Stegun
# 7.1.26 rational approximation (|err| <= 1.5e-7) using only ops that always lower
# in Mosaic (abs / exp / mul / add / where).

_SQRT_HALF = 0.7071067811865476


def _erf(x):
    ax = jnp.abs(x)
    t = 1.0 / (1.0 + 0.3275911 * ax)
    poly = ((((1.061405429 * t - 1.453152027) * t + 1.421413741) * t
             - 0.284496736) * t + 0.254829592) * t
    y = 1.0 - poly * jnp.exp(-ax * ax)
    return jnp.where(x < 0.0, -y, y)


def _gelu(x):
    return 0.5 * x * (1.0 + _erf(x * _SQRT_HALF))


# ----------------- kernel 1: fused LayerNorm + matmul (+bias, +GELU) ----------

def _ln_matmul_kernel(x_ref, g_ref, b_ref, w_ref, bias_ref, o_ref, *, eps, activation):
    # x_ref: (tm, D) rows; g/b: (1, D); w: (D, tn); bias: (1, tn); o: (tm, tn)
    x = x_ref[...].astype(jnp.float32)
    mean = jnp.mean(x, axis=-1, keepdims=True)
    xc = x - mean
    var = jnp.mean(xc * xc, axis=-1, keepdims=True)
    y = xc * jax.lax.rsqrt(var + eps)
    y = y * g_ref[...].astype(jnp.float32) + b_ref[...].astype(jnp.float32)
    acc = jnp.dot(y, w_ref[...].astype(jnp.float32),
                  preferred_element_type=jnp.float32)
    acc = acc + bias_ref[...].astype(jnp.float32)
    if activation == "gelu":
        acc = _gelu(acc)
    o_ref[...] = acc.astype(o_ref.dtype)


def ln_matmul(x2d, gamma, beta, w, bias, *, activation=None, eps=1e-5):
    """act(LayerNorm(x2d) @ w + bias). x2d: (R, D); w: (D, D_out); bias: (D_out,)."""
    R, D = x2d.shape
    D_out = w.shape[1]
    tm, Rp = _row_tiling(R)
    tn = _col_tile(D_out)
    xp = _pad_rows(x2d, Rp)
    g2, b2 = gamma.reshape(1, D), beta.reshape(1, D)
    bias2 = bias.reshape(1, D_out)
    kernel = functools.partial(_ln_matmul_kernel, eps=eps, activation=activation)
    itemsize = jnp.dtype(x2d.dtype).itemsize
    cost = pl.CostEstimate(
        flops=2 * Rp * D * D_out + 10 * Rp * D,
        transcendentals=(Rp * D_out if activation == "gelu" else 0) + Rp,
        bytes_accessed=itemsize * (Rp * D + D * D_out + Rp * D_out + 2 * D + D_out))
    out = pl.pallas_call(
        kernel,
        out_shape=jax.ShapeDtypeStruct((Rp, D_out), x2d.dtype),
        grid_spec=pltpu.PrefetchScalarGridSpec(
            num_scalar_prefetch=0,
            grid=(Rp // tm, D_out // tn),
            in_specs=[
                pl.BlockSpec((tm, D), lambda i, j: (i, 0)),
                pl.BlockSpec((1, D), lambda i, j: (0, 0)),
                pl.BlockSpec((1, D), lambda i, j: (0, 0)),
                pl.BlockSpec((D, tn), lambda i, j: (0, j)),
                pl.BlockSpec((1, tn), lambda i, j: (0, j)),
            ],
            out_specs=pl.BlockSpec((tm, tn), lambda i, j: (i, j)),
        ),
        compiler_params=pltpu.CompilerParams(
            dimension_semantics=("parallel", "parallel")),
        cost_estimate=cost,
    )(xp, g2, b2, w, bias2)
    return out[:R] if Rp != R else out


# ----------------- kernel 2: matmul + bias + residual -------------------------

def _matmul_residual_kernel(x_ref, w_ref, bias_ref, res_ref, o_ref):
    acc = jnp.dot(x_ref[...].astype(jnp.float32), w_ref[...].astype(jnp.float32),
                  preferred_element_type=jnp.float32)
    acc = acc + bias_ref[...].astype(jnp.float32) + res_ref[...].astype(jnp.float32)
    o_ref[...] = acc.astype(o_ref.dtype)


def matmul_bias_residual(x2d, w, bias, res2d):
    """x2d @ w + bias + res2d. x2d: (R, D_in); w: (D_in, D_out); res2d: (R, D_out)."""
    R, D_in = x2d.shape
    D_out = w.shape[1]
    tm, Rp = _row_tiling(R)
    tn = _col_tile(D_out)
    xp = _pad_rows(x2d, Rp)
    resp = _pad_rows(res2d, Rp)
    bias2 = bias.reshape(1, D_out)
    itemsize = jnp.dtype(x2d.dtype).itemsize
    cost = pl.CostEstimate(
        flops=2 * Rp * D_in * D_out,
        transcendentals=0,
        bytes_accessed=itemsize * (Rp * D_in + D_in * D_out + 2 * Rp * D_out + D_out))
    out = pl.pallas_call(
        _matmul_residual_kernel,
        out_shape=jax.ShapeDtypeStruct((Rp, D_out), x2d.dtype),
        grid_spec=pltpu.PrefetchScalarGridSpec(
            num_scalar_prefetch=0,
            grid=(Rp // tm, D_out // tn),
            in_specs=[
                pl.BlockSpec((tm, D_in), lambda i, j: (i, 0)),
                pl.BlockSpec((D_in, tn), lambda i, j: (0, j)),
                pl.BlockSpec((1, tn), lambda i, j: (0, j)),
                pl.BlockSpec((tm, tn), lambda i, j: (i, j)),
            ],
            out_specs=pl.BlockSpec((tm, tn), lambda i, j: (i, j)),
        ),
        compiler_params=pltpu.CompilerParams(
            dimension_semantics=("parallel", "parallel")),
        cost_estimate=cost,
    )(xp, w, bias2, resp)
    return out[:R] if Rp != R else out


# ----------------- kernel 3: per-batch fused multi-head attention -------------
# Consumes the packed QKV tensor (B, N, 3*H*Dh) directly (q | k | v, each head-major)
# and writes the output already in "b n (h d)" layout -> no XLA transposes needed.

def _mha_kernel(qkv_ref, o_ref, *, heads, dim_head, scale):
    inner = heads * dim_head
    qkv = qkv_ref[0].astype(jnp.float32)          # (N, 3*inner), resident in VMEM
    outs = []
    for h in range(heads):                         # static unroll over heads
        q = qkv[:, h * dim_head:(h + 1) * dim_head]
        k = qkv[:, inner + h * dim_head:inner + (h + 1) * dim_head]
        v = qkv[:, 2 * inner + h * dim_head:2 * inner + (h + 1) * dim_head]
        s = jax.lax.dot_general(q, k, (((1,), (1,)), ((), ())),
                                preferred_element_type=jnp.float32) * scale
        s = s - jnp.max(s, axis=-1, keepdims=True)
        p = jnp.exp(s)
        p = p / jnp.sum(p, axis=-1, keepdims=True)
        outs.append(jax.lax.dot_general(p, v, (((1,), (0,)), ((), ())),
                                        preferred_element_type=jnp.float32))
    # single lane-dense store of the merged-head output
    o_ref[0] = jnp.concatenate(outs, axis=-1).astype(o_ref.dtype)


def attention_fused(qkv3, *, heads, dim_head, scale):
    """qkv3: (B, N, 3*heads*dim_head) -> (B, N, heads*dim_head) in 'b n (h d)' layout."""
    B, N, three_inner = qkv3.shape
    inner = heads * dim_head
    kernel = functools.partial(_mha_kernel, heads=heads, dim_head=dim_head, scale=scale)
    itemsize = jnp.dtype(qkv3.dtype).itemsize
    cost = pl.CostEstimate(
        flops=4 * B * heads * N * N * dim_head,
        transcendentals=B * heads * N * N,
        bytes_accessed=itemsize * (B * N * three_inner + B * N * inner))
    return pl.pallas_call(
        kernel,
        out_shape=jax.ShapeDtypeStruct((B, N, inner), qkv3.dtype),
        grid_spec=pltpu.PrefetchScalarGridSpec(
            num_scalar_prefetch=0,
            grid=(B,),
            in_specs=[pl.BlockSpec((1, N, three_inner), lambda b: (b, 0, 0))],
            out_specs=pl.BlockSpec((1, N, inner), lambda b: (b, 0, 0)),
        ),
        compiler_params=pltpu.CompilerParams(dimension_semantics=("parallel",)),
        cost_estimate=cost,
    )(qkv3)


# -------------------------- Transformer forward -------------------------------

def init_transformer_params(key, dim, depth, heads, dim_head, mlp_dim,
                            dtype=jnp.float32, wscale=0.1):
    """Weights are stored pre-transposed as (D_in, D_out) -- transpose hoisted to init."""
    inner = heads * dim_head
    layers = []
    for _ in range(depth):
        key, kqkv, kout, kbo, kw1, kb1, kw2, kb2 = jax.random.split(key, 8)
        layers.append(dict(
            ln1_g=jnp.ones((dim,), dtype), ln1_b=jnp.zeros((dim,), dtype),
            w_qkv=wscale * jax.random.normal(kqkv, (dim, 3 * inner), dtype),
            w_out=wscale * jax.random.normal(kout, (inner, dim), dtype),
            b_out=wscale * jax.random.normal(kbo, (dim,), dtype),
            ln2_g=jnp.ones((dim,), dtype), ln2_b=jnp.zeros((dim,), dtype),
            w1=wscale * jax.random.normal(kw1, (dim, mlp_dim), dtype),
            b1=wscale * jax.random.normal(kb1, (mlp_dim,), dtype),
            w2=wscale * jax.random.normal(kw2, (mlp_dim, dim), dtype),
            b2=wscale * jax.random.normal(kb2, (dim,), dtype),
        ))
    return layers


def transformer_forward(x, layers, *, heads, dim_head, eps=1e-5):
    """Equivalent of Transformer.forward (dropout p=0.0 / eval -> identity, omitted)."""
    B, N, D = x.shape
    inner = heads * dim_head
    project_out = not (heads == 1 and dim_head == D)
    softmax_scale = dim_head ** (-0.5)
    x2d = x.reshape(B * N, D)
    qkv_bias = jnp.zeros((3 * inner,), x.dtype)            # to_qkv has bias=False
    for layer in layers:
        # ---- x = PreNorm(Attention)(x) + x  (LN fused into the QKV matmul) ----
        qkv = ln_matmul(x2d, layer["ln1_g"], layer["ln1_b"], layer["w_qkv"], qkv_bias,
                        eps=eps)                            # (B*N, 3*inner)
        attn = attention_fused(qkv.reshape(B, N, 3 * inner),
                               heads=heads, dim_head=dim_head,
                               scale=softmax_scale)         # (B, N, inner), 'b n (h d)'
        attn2d = attn.reshape(B * N, inner)                 # free row-major reshape
        if project_out:
            # out-projection with the residual add fused in
            x2d = matmul_bias_residual(attn2d, layer["w_out"], layer["b_out"], x2d)
        else:
            x2d = attn2d + x2d                              # to_out == Identity
        # ---- x = PreNorm(FeedForward)(x) + x  (LN + Linear1 + GELU fused) ----
        h = ln_matmul(x2d, layer["ln2_g"], layer["ln2_b"], layer["w1"], layer["b1"],
                      activation="gelu", eps=eps)           # (B*N, mlp_dim)
        x2d = matmul_bias_residual(h, layer["w2"], layer["b2"], x2d)
    return x2d.reshape(B, N, D)


# ------------------------------ pure-JAX reference -----------------------------

def reference_forward(x, layers, *, heads, dim_head, eps=1e-5):
    hp = jax.lax.Precision.HIGHEST

    def mm(a, b):
        return jnp.matmul(a, b, precision=hp)

    def ln(t, g, b):
        mu = jnp.mean(t, axis=-1, keepdims=True)
        var = jnp.mean((t - mu) ** 2, axis=-1, keepdims=True)
        return (t - mu) * jax.lax.rsqrt(var + eps) * g + b

    B, N, D = x.shape
    inner = heads * dim_head
    project_out = not (heads == 1 and dim_head == D)
    scale = dim_head ** (-0.5)
    for layer in layers:
        h = ln(x, layer["ln1_g"], layer["ln1_b"])
        qkv = mm(h, layer["w_qkv"]).reshape(B, N, 3, heads, dim_head)
        q, k, v = (jnp.transpose(qkv[:, :, i], (0, 2, 1, 3)) for i in range(3))
        dots = jnp.einsum("bhid,bhjd->bhij", q, k, precision=hp) * scale
        attn = jax.nn.softmax(dots, axis=-1)
        o = jnp.einsum("bhij,bhjd->bhid", attn, v, precision=hp)
        o = jnp.transpose(o, (0, 2, 1, 3)).reshape(B, N, inner)
        if project_out:
            x = mm(o, layer["w_out"]) + layer["b_out"] + x
        else:
            x = o + x
        h = ln(x, layer["ln2_g"], layer["ln2_b"])
        h = jax.nn.gelu(mm(h, layer["w1"]) + layer["b1"], approximate=False)
        x = mm(h, layer["w2"]) + layer["b2"] + x
    return x


# ----------------------------------- main -------------------------------------

if __name__ == "__main__":
    DIM, DEPTH, HEADS, DIM_HEAD, MLP_DIM = 64, 2, 4, 16, 128
    B, N = 2, 16

    key = jax.random.PRNGKey(0)
    kx, kp = jax.random.split(key)
    x = jax.random.normal(kx, (B, N, DIM), dtype=jnp.float32)
    layers = init_transformer_params(kp, DIM, DEPTH, HEADS, DIM_HEAD, MLP_DIM)

    fwd = jax.jit(functools.partial(transformer_forward, heads=HEADS, dim_head=DIM_HEAD))
    out = jax.block_until_ready(fwd(x, layers))

    ref = reference_forward(x, layers, heads=HEADS, dim_head=DIM_HEAD)

    assert out.shape == (B, N, DIM)
    max_err = float(jnp.max(jnp.abs(out - ref)))
    assert jnp.allclose(out, ref, atol=1e-3, rtol=1e-3), f"max abs err {max_err}"
    print("KERNEL_OK")
</pallas_src>

<mosaic_0001>
module attributes {stable_mosaic.version = 11 : i64} {
  func.func @_matmul_residual_kernel(%arg0: i32, %arg1: i32, %arg2: memref<32x64xf32, #tpu.memory_space<vmem>>, %arg3: memref<64x64xf32, #tpu.memory_space<vmem>>, %arg4: memref<1x64xf32, #tpu.memory_space<vmem>>, %arg5: memref<32x64xf32, #tpu.memory_space<vmem>>, %arg6: memref<32x64xf32, #tpu.memory_space<vmem>>) attributes {dimension_semantics = [#tpu.dimension_semantics<parallel>, #tpu.dimension_semantics<parallel>], iteration_bounds = array<i64: 1, 1>, scalar_prefetch = 0 : i64, scratch_operands = 0 : i64, tpu.core_type = #tpu.core_type<tc>, window_params = [{transform_indices = @transform_0, window_bounds = array<i64: 32, 64>}, {transform_indices = @transform_1, window_bounds = array<i64: 64, 64>}, {transform_indices = @transform_2, window_bounds = array<i64: 1, 64>}, {transform_indices = @transform_3, window_bounds = array<i64: 32, 64>}, {transform_indices = @transform_4, window_bounds = array<i64: 32, 64>}]} {
    %c0 = arith.constant 0 : index
    %c0_0 = arith.constant 0 : index
    %0 = vector.load %arg2[%c0, %c0_0] : memref<32x64xf32, #tpu.memory_space<vmem>>, vector<32x64xf32>
    %c0_1 = arith.constant 0 : index
    %c0_2 = arith.constant 0 : index
    %1 = vector.load %arg3[%c0_1, %c0_2] : memref<64x64xf32, #tpu.memory_space<vmem>>, vector<64x64xf32>
    %cst = arith.constant dense<0.000000e+00> : vector<32x64xf32>
    %2 = tpu.matmul %0, %1, %cst {dimension_numbers = #tpu.dot_dimension_numbers<[1], [0], [0], [1], [0, 0, 1, 1], [], []>} : vector<32x64xf32>, vector<64x64xf32>, vector<32x64xf32> -> vector<32x64xf32>
    %c0_3 = arith.constant 0 : index
    %c0_4 = arith.constant 0 : index
    %3 = vector.load %arg4[%c0_3, %c0_4] : memref<1x64xf32, #tpu.memory_space<vmem>>, vector<1x64xf32>
    %4 = vector.broadcast %3 : vector<1x64xf32> to vector<32x64xf32>
    %5 = arith.addf %2, %4 : vector<32x64xf32>
    %c0_5 = arith.constant 0 : index
    %c0_6 = arith.constant 0 : index
    %6 = vector.load %arg5[%c0_5, %c0_6] : memref<32x64xf32, #tpu.memory_space<vmem>>, vector<32x64xf32>
    %7 = arith.addf %5, %6 : vector<32x64xf32>
    %c0_7 = arith.constant 0 : index
    %c0_8 = arith.constant 0 : index
    %8 = vector.load %arg6[%c0_7, %c0_8] : memref<32x64xf32, #tpu.memory_space<vmem>>, vector<32x64xf32>
    tpu.vector_store %arg6[%c0_7, %c0_8], %7 {strides = array<i32>} : memref<32x64xf32, #tpu.memory_space<vmem>>, vector<32x64xf32>,
    return
  }
  func.func @transform_0(%arg0: i32, %arg1: i32) -> (i32, i32) {
    %c0_i32 = arith.constant 0 : i32
    %c0_i32_0 = arith.constant 0 : i32
    return %arg0, %c0_i32 : i32, i32
  }
  func.func @transform_1(%arg0: i32, %arg1: i32) -> (i32, i32) {
    %c0_i32 = arith.constant 0 : i32
    %c0_i32_0 = arith.constant 0 : i32
    return %c0_i32, %arg1 : i32, i32
  }
  func.func @transform_2(%arg0: i32, %arg1: i32) -> (i32, i32) {
    %c0_i32 = arith.constant 0 : i32
    %c0_i32_0 = arith.constant 0 : i32
    return %c0_i32, %arg1 : i32, i32
  }
  func.func @transform_3(%arg0: i32, %arg1: i32) -> (i32, i32) {
    %c0_i32 = arith.constant 0 : i32
    return %arg0, %arg1 : i32, i32
  }
  func.func @transform_4(%arg0: i32, %arg1: i32) -> (i32, i32) {
    %c0_i32 = arith.constant 0 : i32
    return %arg0, %arg1 : i32, i32
  }
}

module attributes {stable_mosaic.version = 11 : i64} {
  func.func @_mha_kernel(%arg0: i32, %arg1: memref<1x16x192xf32, #tpu.memory_space<vmem>>, %arg2: memref<1x16x64xf32, #tpu.memory_space<vmem>>) attributes {dimension_semantics = [#tpu.dimension_semantics<parallel>], iteration_bounds = array<i64: 2>, scalar_prefetch = 0 : i64, scratch_operands = 0 : i64, tpu.core_type = #tpu.core_type<tc>, window_params = [{transform_indices = @transform_0, window_bounds = array<i64: 1, 16, 192>}, {transform_indices = @transform_1, window_bounds = array<i64: 1, 16, 64>}]} {
    %c0 = arith.constant 0 : index
    %c0_0 = arith.constant 0 : index
    %c0_1 = arith.constant 0 : index
    %0 = vector.load %arg1[%c0, %c0_0, %c0_1] : memref<1x16x192xf32, #tpu.memory_space<vmem>>, vector<1x16x192xf32>
    %1 = vector.shape_cast %0 : vector<1x16x192xf32> to vector<16x192xf32>
    %2 = vector.extract_strided_slice %1 {offsets = [0, 0], sizes = [16, 16], strides = [1, 1]} : vector<16x192xf32> to vector<16x16xf32>
    %3 = vector.extract_strided_slice %1 {offsets = [0, 64], sizes = [16, 16], strides = [1, 1]} : vector<16x192xf32> to vector<16x16xf32>
    %4 = vector.extract_strided_slice %1 {offsets = [0, 128], sizes = [16, 16], strides = [1, 1]} : vector<16x192xf32> to vector<16x16xf32>
    %cst = arith.constant dense<0.000000e+00> : vector<16x16xf32>
    %5 = tpu.matmul %2, %3, %cst {dimension_numbers = #tpu.dot_dimension_numbers<[1], [1], [0], [0], [0, 0, 1, 0], [], []>} : vector<16x16xf32>, vector<16x16xf32>, vector<16x16xf32> -> vector<16x16xf32>
    %cst_2 = arith.constant 2.500000e-01 : f32
    %6 = vector.broadcast %cst_2 : f32 to vector<16x16xf32>
    %7 = arith.mulf %5, %6 : vector<16x16xf32>
    %cst_3 = arith.constant dense<0xFF800000> : vector<16xf32>
    %8 = vector.multi_reduction <maximumf>, %7, %cst_3 [1] : vector<16x16xf32> to vector<16xf32>
    %9 = vector.shape_cast %8 : vector<16xf32> to vector<16x1xf32>
    %10 = vector.broadcast %9 : vector<16x1xf32> to vector<16x16xf32>
    %11 = arith.subf %7, %10 : vector<16x16xf32>
    %12 = math.exp %11 : vector<16x16xf32>
    %cst_4 = arith.constant dense<0.000000e+00> : vector<16xf32>
    %13 = vector.multi_reduction <add>, %12, %cst_4 [1] : vector<16x16xf32> to vector<16xf32>
    %14 = vector.shape_cast %13 : vector<16xf32> to vector<16x1xf32>
    %15 = vector.broadcast %14 : vector<16x1xf32> to vector<16x16xf32>
    %16 = arith.divf %12, %15 : vector<16x16xf32>
    %cst_5 = arith.constant dense<0.000000e+00> : vector<16x16xf32>
    %17 = tpu.matmul %16, %4, %cst_5 {dimension_numbers = #tpu.dot_dimension_numbers<[1], [0], [0], [1], [0, 0, 1, 1], [], []>} : vector<16x16xf32>, vector<16x16xf32>, vector<16x16xf32> -> vector<16x16xf32>
    %18 = vector.extract_strided_slice %1 {offsets = [0, 16], sizes = [16, 16], strides = [1, 1]} : vector<16x192xf32> to vector<16x16xf32>
    %19 = vector.extract_strided_slice %1 {offsets = [0, 80], sizes = [16, 16], strides = [1, 1]} : vector<16x192xf32> to vector<16x16xf32>
    %20 = vector.extract_strided_slice %1 {offsets = [0, 144], sizes = [16, 16], strides = [1, 1]} : vector<16x192xf32> to vector<16x16xf32>
    %cst_6 = arith.constant dense<0.000000e+00> : vector<16x16xf32>
    %21 = tpu.matmul %18, %19, %cst_6 {dimension_numbers = #tpu.dot_dimension_numbers<[1], [1], [0], [0], [0, 0, 1, 0], [], []>} : vector<16x16xf32>, vector<16x16xf32>, vector<16x16xf32> -> vector<16x16xf32>
    %cst_7 = arith.constant 2.500000e-01 : f32
    %22 = vector.broadcast %cst_7 : f32 to vector<16x16xf32>
    %23 = arith.mulf %21, %22 : vector<16x16xf32>
    %cst_8 = arith.constant dense<0xFF800000> : vector<16xf32>
    %24 = vector.multi_reduction <maximumf>, %23, %cst_8 [1] : vector<16x16xf32> to vector<16xf32>
    %25 = vector.shape_cast %24 : vector<16xf32> to vector<16x1xf32>
    %26 = vector.broadcast %25 : vector<16x1xf32> to vector<16x16xf32>
    %27 = arith.subf %23, %26 : vector<16x16xf32>
    %28 = math.exp %27 : vector<16x16xf32>
    %cst_9 = arith.constant dense<0.000000e+00> : vector<16xf32>
    %29 = vector.multi_reduction <add>, %28, %cst_9 [1] : vector<16x16xf32> to vector<16xf32>
    %30 = vector.shape_cast %29 : vector<16xf32> to vector<16x1xf32>
    %31 = vector.broadcast %30 : vector<16x1xf32> to vector<16x16xf32>
    %32 = arith.divf %28, %31 : vector<16x16xf32>
    %cst_10 = arith.constant dense<0.000000e+00> : vector<16x16xf32>
    %33 = tpu.matmul %32, %20, %cst_10 {dimension_numbers = #tpu.dot_dimension_numbers<[1], [0], [0], [1], [0, 0, 1, 1], [], []>} : vector<16x16xf32>, vector<16x16xf32>, vector<16x16xf32> -> vector<16x16xf32>
    %34 = vector.extract_strided_slice %1 {offsets = [0, 32], sizes = [16, 16], strides = [1, 1]} : vector<16x192xf32> to vector<16x16xf32>
    %35 = vector.extract_strided_slice %1 {offsets = [0, 96], sizes = [16, 16], strides = [1, 1]} : vector<16x192xf32> to vector<16x16xf32>
    %36 = vector.extract_strided_slice %1 {offsets = [0, 160], sizes = [16, 16], strides = [1, 1]} : vector<16x192xf32> to vector<16x16xf32>
    %cst_11 = arith.constant dense<0.000000e+00> : vector<16x16xf32>
    %37 = tpu.matmul %34, %35, %cst_11 {dimension_numbers = #tpu.dot_dimension_numbers<[1], [1], [0], [0], [0, 0, 1, 0], [], []>} : vector<16x16xf32>, vector<16x16xf32>, vector<16x16xf32> -> vector<16x16xf32>
    %cst_12 = arith.constant 2.500000e-01 : f32
    %38 = vector.broadcast %cst_12 : f32 to vector<16x16xf32>
    %39 = arith.mulf %37, %38 : vector<16x16xf32>
    %cst_13 = arith.constant dense<0xFF800000> : vector<16xf32>
    %40 = vector.multi_reduction <maximumf>, %39, %cst_13 [1] : vector<16x16xf32> to vector<16xf32>
    %41 = vector.shape_cast %40 : vector<16xf32> to vector<16x1xf32>
    %42 = vector.broadcast %41 : vector<16x1xf32> to vector<16x16xf32>
    %43 = arith.subf %39, %42 : vector<16x16xf32>
    %44 = math.exp %43 : vector<16x16xf32>
    %cst_14 = arith.constant dense<0.000000e+00> : vector<16xf32>
    %45 = vector.multi_reduction <add>, %44, %cst_14 [1] : vector<16x16xf32> to vector<16xf32>
    %46 = vector.shape_cast %45 : vector<16xf32> to vector<16x1xf32>
    %47 = vector.broadcast %46 : vector<16x1xf32> to vector<16x16xf32>
    %48 = arith.divf %44, %47 : vector<16x16xf32>
    %cst_15 = arith.constant dense<0.000000e+00> : vector<16x16xf32>
    %49 = tpu.matmul %48, %36, %cst_15 {dimension_numbers = #tpu.dot_dimension_numbers<[1], [0], [0], [1], [0, 0, 1, 1], [], []>} : vector<16x16xf32>, vector<16x16xf32>, vector<16x16xf32> -> vector<16x16xf32>
    %50 = vector.extract_strided_slice %1 {offsets = [0, 48], sizes = [16, 16], strides = [1, 1]} : vector<16x192xf32> to vector<16x16xf32>
    %51 = vector.extract_strided_slice %1 {offsets = [0, 112], sizes = [16, 16], strides = [1, 1]} : vector<16x192xf32> to vector<16x16xf32>
    %52 = vector.extract_strided_slice %1 {offsets = [0, 176], sizes = [16, 16], strides = [1, 1]} : vector<16x192xf32> to vector<16x16xf32>
    %cst_16 = arith.constant dense<0.000000e+00> : vector<16x16xf32>
    %53 = tpu.matmul %50, %51, %cst_16 {dimension_numbers = #tpu.dot_dimension_numbers<[1], [1], [0], [0], [0, 0, 1, 0], [], []>} : vector<16x16xf32>, vector<16x16xf32>, vector<16x16xf32> -> vector<16x16xf32>
    %cst_17 = arith.constant 2.500000e-01 : f32
    %54 = vector.broadcast %cst_17 : f32 to vector<16x16xf32>
    %55 = arith.mulf %53, %54 : vector<16x16xf32>
    %cst_18 = arith.constant dense<0xFF800000> : vector<16xf32>
    %56 = vector.multi_reduction <maximumf>, %55, %cst_18 [1] : vector<16x16xf32> to vector<16xf32>
    %57 = vector.shape_cast %56 : vector<16xf32> to vector<16x1xf32>
    %58 = vector.broadcast %57 : vector<16x1xf32> to vector<16x16xf32>
    %59 = arith.subf %55, %58 : vector<16x16xf32>
    %60 = math.exp %59 : vector<16x16xf32>
    %cst_19 = arith.constant dense<0.000000e+00> : vector<16xf32>
    %61 = vector.multi_reduction <add>, %60, %cst_19 [1] : vector<16x16xf32> to vector<16xf32>
    %62 = vector.shape_cast %61 : vector<16xf32> to vector<16x1xf32>
    %63 = vector.broadcast %62 : vector<16x1xf32> to vector<16x16xf32>
    %64 = arith.divf %60, %63 : vector<16x16xf32>
    %cst_20 = arith.constant dense<0.000000e+00> : vector<16x16xf32>
    %65 = tpu.matmul %64, %52, %cst_20 {dimension_numbers = #tpu.dot_dimension_numbers<[1], [0], [0], [1], [0, 0, 1, 1], [], []>} : vector<16x16xf32>, vector<16x16xf32>, vector<16x16xf32> -> vector<16x16xf32>
    %66 = tpu.concatenate %17, %33, %49, %65 in 1 : vector<16x16xf32>, vector<16x16xf32>, vector<16x16xf32>, vector<16x16xf32> -> vector<16x64xf32>
    %c0_21 = arith.constant 0 : index
    %c0_22 = arith.constant 0 : index
    %c0_23 = arith.constant 0 : index
    %67 = vector.load %arg2[%c0_21, %c0_22, %c0_23] : memref<1x16x64xf32, #tpu.memory_space<vmem>>, vector<1x16x64xf32>
    %68 = vector.shape_cast %67 : vector<1x16x64xf32> to vector<16x64xf32>
    %69 = vector.shape_cast %66 : vector<16x64xf32> to vector<1x16x64xf32>
    tpu.vector_store %arg2[%c0_21, %c0_22, %c0_23], %69 {strides = array<i32>} : memref<1x16x64xf32, #tpu.memory_space<vmem>>, vector<1x16x64xf32>,
    return
  }
  func.func @transform_0(%arg0: i32) -> (i32, i32, i32) {
    %c0_i32 = arith.constant 0 : i32
    %c0_i32_0 = arith.constant 0 : i32
    %c0_i32_1 = arith.constant 0 : i32
    return %arg0, %c0_i32, %c0_i32_0 : i32, i32, i32
  }
  func.func @transform_1(%arg0: i32) -> (i32, i32, i32) {
    %c0_i32 = arith.constant 0 : i32
    %c0_i32_0 = arith.constant 0 : i32
    %c0_i32_1 = arith.constant 0 : i32
    return %arg0, %c0_i32, %c0_i32_0 : i32, i32, i32
  }
}

module attributes {stable_mosaic.version = 11 : i64} {
  func.func @_ln_matmul_kernel(%arg0: i32, %arg1: i32, %arg2: memref<32x64xf32, #tpu.memory_space<vmem>>, %arg3: memref<1x64xf32, #tpu.memory_space<vmem>>, %arg4: memref<1x64xf32, #tpu.memory_space<vmem>>, %arg5: memref<64x192xf32, #tpu.memory_space<vmem>>, %arg6: memref<1x192xf32, #tpu.memory_space<vmem>>, %arg7: memref<32x192xf32, #tpu.memory_space<vmem>>) attributes {dimension_semantics = [#tpu.dimension_semantics<parallel>, #tpu.dimension_semantics<parallel>], iteration_bounds = array<i64: 1, 1>, scalar_prefetch = 0 : i64, scratch_operands = 0 : i64, tpu.core_type = #tpu.core_type<tc>, window_params = [{transform_indices = @transform_0, window_bounds = array<i64: 32, 64>}, {pipeline_mode = #tpu.pipeline_mode<synchronous>, transform_indices = @transform_1, window_bounds = array<i64: 1, 64>}, {pipeline_mode = #tpu.pipeline_mode<synchronous>, transform_indices = @transform_2, window_bounds = array<i64: 1, 64>}, {transform_indices = @transform_3, window_bounds = array<i64: 64, 192>}, {transform_indices = @transform_4, window_bounds = array<i64: 1, 192>}, {transform_indices = @transform_5, window_bounds = array<i64: 32, 192>}]} {
    %c0 = arith.constant 0 : index
    %c0_0 = arith.constant 0 : index
    %0 = vector.load %arg2[%c0, %c0_0] : memref<32x64xf32, #tpu.memory_space<vmem>>, vector<32x64xf32>
    %cst = arith.constant dense<0.000000e+00> : vector<32xf32>
    %1 = vector.multi_reduction <add>, %0, %cst [1] : vector<32x64xf32> to vector<32xf32>
    %2 = vector.shape_cast %1 : vector<32xf32> to vector<32x1xf32>
    %cst_1 = arith.constant 6.400000e+01 : f32
    %3 = vector.broadcast %cst_1 : f32 to vector<32x1xf32>
    %4 = arith.divf %2, %3 : vector<32x1xf32>
    %5 = vector.broadcast %4 : vector<32x1xf32> to vector<32x64xf32>
    %6 = arith.subf %0, %5 : vector<32x64xf32>
    %7 = arith.mulf %6, %6 : vector<32x64xf32>
    %cst_2 = arith.constant dense<0.000000e+00> : vector<32xf32>
    %8 = vector.multi_reduction <add>, %7, %cst_2 [1] : vector<32x64xf32> to vector<32xf32>
    %9 = vector.shape_cast %8 : vector<32xf32> to vector<32x1xf32>
    %cst_3 = arith.constant 6.400000e+01 : f32
    %10 = vector.broadcast %cst_3 : f32 to vector<32x1xf32>
    %11 = arith.divf %9, %10 : vector<32x1xf32>
    %cst_4 = arith.constant 9.99999974E-6 : f32
    %12 = vector.broadcast %cst_4 : f32 to vector<32x1xf32>
    %13 = arith.addf %11, %12 : vector<32x1xf32>
    %14 = math.rsqrt %13 : vector<32x1xf32>
    %15 = vector.broadcast %14 : vector<32x1xf32> to vector<32x64xf32>
    %16 = arith.mulf %6, %15 : vector<32x64xf32>
    %c0_5 = arith.constant 0 : index
    %c0_6 = arith.constant 0 : index
    %17 = vector.load %arg3[%c0_5, %c0_6] : memref<1x64xf32, #tpu.memory_space<vmem>>, vector<1x64xf32>
    %18 = vector.broadcast %17 : vector<1x64xf32> to vector<32x64xf32>
    %19 = arith.mulf %16, %18 : vector<32x64xf32>
    %c0_7 = arith.constant 0 : index
    %c0_8 = arith.constant 0 : index
    %20 = vector.load %arg4[%c0_7, %c0_8] : memref<1x64xf32, #tpu.memory_space<vmem>>, vector<1x64xf32>
    %21 = vector.broadcast %20 : vector<1x64xf32> to vector<32x64xf32>
    %22 = arith.addf %19, %21 : vector<32x64xf32>
    %c0_9 = arith.constant 0 : index
    %c0_10 = arith.constant 0 : index
    %23 = vector.load %arg5[%c0_9, %c0_10] : memref<64x192xf32, #tpu.memory_space<vmem>>, vector<64x192xf32>
    %cst_11 = arith.constant dense<0.000000e+00> : vector<32x192xf32>
    %24 = tpu.matmul %22, %23, %cst_11 {dimension_numbers = #tpu.dot_dimension_numbers<[1], [0], [0], [1], [0, 0, 1, 1], [], []>} : vector<32x64xf32>, vector<64x192xf32>, vector<32x192xf32> -> vector<32x192xf32>
    %c0_12 = arith.constant 0 : index
    %c0_13 = arith.constant 0 : index
    %25 = vector.load %arg6[%c0_12, %c0_13] : memref<1x192xf32, #tpu.memory_space<vmem>>, vector<1x192xf32>
    %26 = vector.broadcast %25 : vector<1x192xf32> to vector<32x192xf32>
    %27 = arith.addf %24, %26 : vector<32x192xf32>
    %c0_14 = arith.constant 0 : index
    %c0_15 = arith.constant 0 : index
    %28 = vector.load %arg7[%c0_14, %c0_15] : memref<32x192xf32, #tpu.memory_space<vmem>>, vector<32x192xf32>
    tpu.vector_store %arg7[%c0_14, %c0_15], %27 {strides = array<i32>} : memref<32x192xf32, #tpu.memory_space<vmem>>, vector<32x192xf32>,
    return
  }
  func.func @transform_0(%arg0: i32, %arg1: i32) -> (i32, i32) {
    %c0_i32 = arith.constant 0 : i32
    %c0_i32_0 = arith.constant 0 : i32
    return %arg0, %c0_i32 : i32, i32
  }
  func.func @transform_1(%arg0: i32, %arg1: i32) -> (i32, i32) {
    %c0_i32 = arith.constant 0 : i32
    %c0_i32_0 = arith.constant 0 : i32
    %c0_i32_1 = arith.constant 0 : i32
    return %c0_i32, %c0_i32_0 : i32, i32
  }
  func.func @transform_2(%arg0: i32, %arg1: i32) -> (i32, i32) {
    %c0_i32 = arith.constant 0 : i32
    %c0_i32_0 = arith.constant 0 : i32
    %c0_i32_1 = arith.constant 0 : i32
    return %c0_i32, %c0_i32_0 : i32, i32
  }
  func.func @transform_3(%arg0: i32, %arg1: i32) -> (i32, i32) {
    %c0_i32 = arith.constant 0 : i32
    %c0_i32_0 = arith.constant 0 : i32
    return %c0_i32, %arg1 : i32, i32
  }
  func.func @transform_4(%arg0: i32, %arg1: i32) -> (i32, i32) {
    %c0_i32 = arith.constant 0 : i32
    %c0_i32_0 = arith.constant 0 : i32
    return %c0_i32, %arg1 : i32, i32
  }
  func.func @transform_5(%arg0: i32, %arg1: i32) -> (i32, i32) {
    %c0_i32 = arith.constant 0 : i32
    return %arg0, %arg1 : i32, i32
  }
}

module attributes {stable_mosaic.version = 11 : i64} {
  func.func @_ln_matmul_kernel(%arg0: i32, %arg1: i32, %arg2: memref<32x64xf32, #tpu.memory_space<vmem>>, %arg3: memref<1x64xf32, #tpu.memory_space<vmem>>, %arg4: memref<1x64xf32, #tpu.memory_space<vmem>>, %arg5: memref<64x128xf32, #tpu.memory_space<vmem>>, %arg6: memref<1x128xf32, #tpu.memory_space<vmem>>, %arg7: memref<32x128xf32, #tpu.memory_space<vmem>>) attributes {dimension_semantics = [#tpu.dimension_semantics<parallel>, #tpu.dimension_semantics<parallel>], iteration_bounds = array<i64: 1, 1>, scalar_prefetch = 0 : i64, scratch_operands = 0 : i64, tpu.core_type = #tpu.core_type<tc>, window_params = [{transform_indices = @transform_0, window_bounds = array<i64: 32, 64>}, {pipeline_mode = #tpu.pipeline_mode<synchronous>, transform_indices = @transform_1, window_bounds = array<i64: 1, 64>}, {pipeline_mode = #tpu.pipeline_mode<synchronous>, transform_indices = @transform_2, window_bounds = array<i64: 1, 64>}, {transform_indices = @transform_3, window_bounds = array<i64: 64, 128>}, {transform_indices = @transform_4, window_bounds = array<i64: 1, 128>}, {transform_indices = @transform_5, window_bounds = array<i64: 32, 128>}]} {
    %c0 = arith.constant 0 : index
    %c0_0 = arith.constant 0 : index
    %0 = vector.load %arg2[%c0, %c0_0] : memref<32x64xf32, #tpu.memory_space<vmem>>, vector<32x64xf32>
    %cst = arith.constant dense<0.000000e+00> : vector<32xf32>
    %1 = vector.multi_reduction <add>, %0, %cst [1] : vector<32x64xf32> to vector<32xf32>
    %2 = vector.shape_cast %1 : vector<32xf32> to vector<32x1xf32>
    %cst_1 = arith.constant 6.400000e+01 : f32
    %3 = vector.broadcast %cst_1 : f32 to vector<32x1xf32>
    %4 = arith.divf %2, %3 : vector<32x1xf32>
    %5 = vector.broadcast %4 : vector<32x1xf32> to vector<32x64xf32>
    %6 = arith.subf %0, %5 : vector<32x64xf32>
    %7 = arith.mulf %6, %6 : vector<32x64xf32>
    %cst_2 = arith.constant dense<0.000000e+00> : vector<32xf32>
    %8 = vector.multi_reduction <add>, %7, %cst_2 [1] : vector<32x64xf32> to vector<32xf32>
    %9 = vector.shape_cast %8 : vector<32xf32> to vector<32x1xf32>
    %cst_3 = arith.constant 6.400000e+01 : f32
    %10 = vector.broadcast %cst_3 : f32 to vector<32x1xf32>
    %11 = arith.divf %9, %10 : vector<32x1xf32>
    %cst_4 = arith.constant 9.99999974E-6 : f32
    %12 = vector.broadcast %cst_4 : f32 to vector<32x1xf32>
    %13 = arith.addf %11, %12 : vector<32x1xf32>
    %14 = math.rsqrt %13 : vector<32x1xf32>
    %15 = vector.broadcast %14 : vector<32x1xf32> to vector<32x64xf32>
    %16 = arith.mulf %6, %15 : vector<32x64xf32>
    %c0_5 = arith.constant 0 : index
    %c0_6 = arith.constant 0 : index
    %17 = vector.load %arg3[%c0_5, %c0_6] : memref<1x64xf32, #tpu.memory_space<vmem>>, vector<1x64xf32>
    %18 = vector.broadcast %17 : vector<1x64xf32> to vector<32x64xf32>
    %19 = arith.mulf %16, %18 : vector<32x64xf32>
    %c0_7 = arith.constant 0 : index
    %c0_8 = arith.constant 0 : index
    %20 = vector.load %arg4[%c0_7, %c0_8] : memref<1x64xf32, #tpu.memory_space<vmem>>, vector<1x64xf32>
    %21 = vector.broadcast %20 : vector<1x64xf32> to vector<32x64xf32>
    %22 = arith.addf %19, %21 : vector<32x64xf32>
    %c0_9 = arith.constant 0 : index
    %c0_10 = arith.constant 0 : index
    %23 = vector.load %arg5[%c0_9, %c0_10] : memref<64x128xf32, #tpu.memory_space<vmem>>, vector<64x128xf32>
    %cst_11 = arith.constant dense<0.000000e+00> : vector<32x128xf32>
    %24 = tpu.matmul %22, %23, %cst_11 {dimension_numbers = #tpu.dot_dimension_numbers<[1], [0], [0], [1], [0, 0, 1, 1], [], []>} : vector<32x64xf32>, vector<64x128xf32>, vector<32x128xf32> -> vector<32x128xf32>
    %c0_12 = arith.constant 0 : index
    %c0_13 = arith.constant 0 : index
    %25 = vector.load %arg6[%c0_12, %c0_13] : memref<1x128xf32, #tpu.memory_space<vmem>>, vector<1x128xf32>
    %26 = vector.broadcast %25 : vector<1x128xf32> to vector<32x128xf32>
    %27 = arith.addf %24, %26 : vector<32x128xf32>
    %cst_14 = arith.constant 5.000000e-01 : f32
    %28 = vector.broadcast %cst_14 : f32 to vector<32x128xf32>
    %29 = arith.mulf %28, %27 : vector<32x128xf32>
    %cst_15 = arith.constant 0.707106769 : f32
    %30 = vector.broadcast %cst_15 : f32 to vector<32x128xf32>
    %31 = arith.mulf %27, %30 : vector<32x128xf32>
    %32 = math.absf %31 : vector<32x128xf32>
    %cst_16 = arith.constant 0.327591091 : f32
    %33 = vector.broadcast %cst_16 : f32 to vector<32x128xf32>
    %34 = arith.mulf %33, %32 : vector<32x128xf32>
    %cst_17 = arith.constant 1.000000e+00 : f32
    %35 = vector.broadcast %cst_17 : f32 to vector<32x128xf32>
    %36 = arith.addf %35, %34 : vector<32x128xf32>
    %cst_18 = arith.constant 1.000000e+00 : f32
    %37 = vector.broadcast %cst_18 : f32 to vector<32x128xf32>
    %38 = arith.divf %37, %36 : vector<32x128xf32>
    %cst_19 = arith.constant 1.06140542 : f32
    %39 = vector.broadcast %cst_19 : f32 to vector<32x128xf32>
    %40 = arith.mulf %39, %38 : vector<32x128xf32>
    %cst_20 = arith.constant 1.45315206 : f32
    %41 = vector.broadcast %cst_20 : f32 to vector<32x128xf32>
    %42 = arith.subf %40, %41 : vector<32x128xf32>
    %43 = arith.mulf %42, %38 : vector<32x128xf32>
    %cst_21 = arith.constant 1.42141378 : f32
    %44 = vector.broadcast %cst_21 : f32 to vector<32x128xf32>
    %45 = arith.addf %43, %44 : vector<32x128xf32>
    %46 = arith.mulf %45, %38 : vector<32x128xf32>
    %cst_22 = arith.constant 0.284496725 : f32
    %47 = vector.broadcast %cst_22 : f32 to vector<32x128xf32>
    %48 = arith.subf %46, %47 : vector<32x128xf32>
    %49 = arith.mulf %48, %38 : vector<32x128xf32>
    %cst_23 = arith.constant 0.254829586 : f32
    %50 = vector.broadcast %cst_23 : f32 to vector<32x128xf32>
    %51 = arith.addf %49, %50 : vector<32x128xf32>
    %52 = arith.mulf %51, %38 : vector<32x128xf32>
    %cst_24 = arith.constant 0.000000e+00 : f32
    %53 = vector.broadcast %cst_24 : f32 to vector<32x128xf32>
    %54 = arith.subf %53, %32 : vector<32x128xf32>
    %55 = arith.mulf %54, %32 : vector<32x128xf32>
    %56 = math.exp %55 : vector<32x128xf32>
    %57 = arith.mulf %52, %56 : vector<32x128xf32>
    %cst_25 = arith.constant 1.000000e+00 : f32
    %58 = vector.broadcast %cst_25 : f32 to vector<32x128xf32>
    %59 = arith.subf %58, %57 : vector<32x128xf32>
    %cst_26 = arith.constant 0.000000e+00 : f32
    %60 = vector.broadcast %cst_26 : f32 to vector<32x128xf32>
    %61 = arith.cmpf olt, %31, %60 : vector<32x128xf32>
    %cst_27 = arith.constant 0.000000e+00 : f32
    %62 = vector.broadcast %cst_27 : f32 to vector<32x128xf32>
    %63 = arith.subf %62, %59 : vector<32x128xf32>
    %64 = arith.select %61, %63, %59 : vector<32x128xi1>, vector<32x128xf32>
    %cst_28 = arith.constant 1.000000e+00 : f32
    %65 = vector.broadcast %cst_28 : f32 to vector<32x128xf32>
    %66 = arith.addf %65, %64 : vector<32x128xf32>
    %67 = arith.mulf %29, %66 : vector<32x128xf32>
    %c0_29 = arith.constant 0 : index
    %c0_30 = arith.constant 0 : index
    %68 = vector.load %arg7[%c0_29, %c0_30] : memref<32x128xf32, #tpu.memory_space<vmem>>, vector<32x128xf32>
    tpu.vector_store %arg7[%c0_29, %c0_30], %67 {strides = array<i32>} : memref<32x128xf32, #tpu.memory_space<vmem>>, vector<32x128xf32>,
    return
  }
  func.func @transform_0(%arg0: i32, %arg1: i32) -> (i32, i32) {
    %c0_i32 = arith.constant 0 : i32
    %c0_i32_0 = arith.constant 0 : i32
    return %arg0, %c0_i32 : i32, i32
  }
  func.func @transform_1(%arg0: i32, %arg1: i32) -> (i32, i32) {
    %c0_i32 = arith.constant 0 : i32
    %c0_i32_0 = arith.constant 0 : i32
    %c0_i32_1 = arith.constant 0 : i32
    return %c0_i32, %c0_i32_0 : i32, i32
  }
  func.func @transform_2(%arg0: i32, %arg1: i32) -> (i32, i32) {
    %c0_i32 = arith.constant 0 : i32
    %c0_i32_0 = arith.constant 0 : i32
    %c0_i32_1 = arith.constant 0 : i32
    return %c0_i32, %c0_i32_0 : i32, i32
  }
  func.func @transform_3(%arg0: i32, %arg1: i32) -> (i32, i32) {
    %c0_i32 = arith.constant 0 : i32
    %c0_i32_0 = arith.constant 0 : i32
    return %c0_i32, %arg1 : i32, i32
  }
  func.func @transform_4(%arg0: i32, %arg1: i32) -> (i32, i32) {
    %c0_i32 = arith.constant 0 : i32
    %c0_i32_0 = arith.constant 0 : i32
    return %c0_i32, %arg1 : i32, i32
  }
  func.func @transform_5(%arg0: i32, %arg1: i32) -> (i32, i32) {
    %c0_i32 = arith.constant 0 : i32
    return %arg0, %arg1 : i32, i32
  }
}

module attributes {stable_mosaic.version = 11 : i64} {
  func.func @_matmul_residual_kernel(%arg0: i32, %arg1: i32, %arg2: memref<32x128xf32, #tpu.memory_space<vmem>>, %arg3: memref<128x64xf32, #tpu.memory_space<vmem>>, %arg4: memref<1x64xf32, #tpu.memory_space<vmem>>, %arg5: memref<32x64xf32, #tpu.memory_space<vmem>>, %arg6: memref<32x64xf32, #tpu.memory_space<vmem>>) attributes {dimension_semantics = [#tpu.dimension_semantics<parallel>, #tpu.dimension_semantics<parallel>], iteration_bounds = array<i64: 1, 1>, scalar_prefetch = 0 : i64, scratch_operands = 0 : i64, tpu.core_type = #tpu.core_type<tc>, window_params = [{transform_indices = @transform_0, window_bounds = array<i64: 32, 128>}, {transform_indices = @transform_1, window_bounds = array<i64: 128, 64>}, {transform_indices = @transform_2, window_bounds = array<i64: 1, 64>}, {transform_indices = @transform_3, window_bounds = array<i64: 32, 64>}, {transform_indices = @transform_4, window_bounds = array<i64: 32, 64>}]} {
    %c0 = arith.constant 0 : index
    %c0_0 = arith.constant 0 : index
    %0 = vector.load %arg2[%c0, %c0_0] : memref<32x128xf32, #tpu.memory_space<vmem>>, vector<32x128xf32>
    %c0_1 = arith.constant 0 : index
    %c0_2 = arith.constant 0 : index
    %1 = vector.load %arg3[%c0_1, %c0_2] : memref<128x64xf32, #tpu.memory_space<vmem>>, vector<128x64xf32>
    %cst = arith.constant dense<0.000000e+00> : vector<32x64xf32>
    %2 = tpu.matmul %0, %1, %cst {dimension_numbers = #tpu.dot_dimension_numbers<[1], [0], [0], [1], [0, 0, 1, 1], [], []>} : vector<32x128xf32>, vector<128x64xf32>, vector<32x64xf32> -> vector<32x64xf32>
    %c0_3 = arith.constant 0 : index
    %c0_4 = arith.constant 0 : index
    %3 = vector.load %arg4[%c0_3, %c0_4] : memref<1x64xf32, #tpu.memory_space<vmem>>, vector<1x64xf32>
    %4 = vector.broadcast %3 : vector<1x64xf32> to vector<32x64xf32>
    %5 = arith.addf %2, %4 : vector<32x64xf32>
    %c0_5 = arith.constant 0 : index
    %c0_6 = arith.constant 0 : index
    %6 = vector.load %arg5[%c0_5, %c0_6] : memref<32x64xf32, #tpu.memory_space<vmem>>, vector<32x64xf32>
    %7 = arith.addf %5, %6 : vector<32x64xf32>
    %c0_7 = arith.constant 0 : index
    %c0_8 = arith.constant 0 : index
    %8 = vector.load %arg6[%c0_7, %c0_8] : memref<32x64xf32, #tpu.memory_space<vmem>>, vector<32x64xf32>
    tpu.vector_store %arg6[%c0_7, %c0_8], %7 {strides = array<i32>} : memref<32x64xf32, #tpu.memory_space<vmem>>, vector<32x64xf32>,
    return
  }
  func.func @transform_0(%arg0: i32, %arg1: i32) -> (i32, i32) {
    %c0_i32 = arith.constant 0 : i32
    %c0_i32_0 = arith.constant 0 : i32
    return %arg0, %c0_i32 : i32, i32
  }
  func.func @transform_1(%arg0: i32, %arg1: i32) -> (i32, i32) {
    %c0_i32 = arith.constant 0 : i32
    %c0_i32_0 = arith.constant 0 : i32
    return %c0_i32, %arg1 : i32, i32
  }
  func.func @transform_2(%arg0: i32, %arg1: i32) -> (i32, i32) {
    %c0_i32 = arith.constant 0 : i32
    %c0_i32_0 = arith.constant 0 : i32
    return %c0_i32, %arg1 : i32, i32
  }
  func.func @transform_3(%arg0: i32, %arg1: i32) -> (i32, i32) {
    %c0_i32 = arith.constant 0 : i32
    return %arg0, %arg1 : i32, i32
  }
  func.func @transform_4(%arg0: i32, %arg1: i32) -> (i32, i32) {
    %c0_i32 = arith.constant 0 : i32
    return %arg0, %arg1 : i32, i32
  }
}

module attributes {stable_mosaic.version = 11 : i64} {
  func.func @_matmul_residual_kernel(%arg0: i32, %arg1: i32, %arg2: memref<32x128xf32, #tpu.memory_space<vmem>>, %arg3: memref<128x64xf32, #tpu.memory_space<vmem>>, %arg4: memref<1x64xf32, #tpu.memory_space<vmem>>, %arg5: memref<32x64xf32, #tpu.memory_space<vmem>>, %arg6: memref<32x64xf32, #tpu.memory_space<vmem>>) attributes {dimension_semantics = [#tpu.dimension_semantics<parallel>, #tpu.dimension_semantics<parallel>], iteration_bounds = array<i64: 1, 1>, scalar_prefetch = 0 : i64, scratch_operands = 0 : i64, tpu.core_type = #tpu.core_type<tc>, window_params = [{transform_indices = @transform_0, window_bounds = array<i64: 32, 128>}, {transform_indices = @transform_1, window_bounds = array<i64: 128, 64>}, {transform_indices = @transform_2, window_bounds = array<i64: 1, 64>}, {transform_indices = @transform_3, window_bounds = array<i64: 32, 64>}, {transform_indices = @transform_4, window_bounds = array<i64: 32, 64>}]} {
    %c0 = arith.constant 0 : index
    %c0_0 = arith.constant 0 : index
    %0 = vector.load %arg2[%c0, %c0_0] : memref<32x128xf32, #tpu.memory_space<vmem>>, vector<32x128xf32>
    %c0_1 = arith.constant 0 : index
    %c0_2 = arith.constant 0 : index
    %1 = vector.load %arg3[%c0_1, %c0_2] : memref<128x64xf32, #tpu.memory_space<vmem>>, vector<128x64xf32>
    %cst = arith.constant dense<0.000000e+00> : vector<32x64xf32>
    %2 = tpu.matmul %0, %1, %cst {dimension_numbers = #tpu.dot_dimension_numbers<[1], [0], [0], [1], [0, 0, 1, 1], [], []>} : vector<32x128xf32>, vector<128x64xf32>, vector<32x64xf32> -> vector<32x64xf32>
    %c0_3 = arith.constant 0 : index
    %c0_4 = arith.constant 0 : index
    %3 = vector.load %arg4[%c0_3, %c0_4] : memref<1x64xf32, #tpu.memory_space<vmem>>, vector<1x64xf32>
    %4 = vector.broadcast %3 : vector<1x64xf32> to vector<32x64xf32>
    %5 = arith.addf %2, %4 : vector<32x64xf32>
    %c0_5 = arith.constant 0 : index
    %c0_6 = arith.constant 0 : index
    %6 = vector.load %arg5[%c0_5, %c0_6] : memref<32x64xf32, #tpu.memory_space<vmem>>, vector<32x64xf32>
    %7 = arith.addf %5, %6 : vector<32x64xf32>
    %c0_7 = arith.constant 0 : index
    %c0_8 = arith.constant 0 : index
    %8 = vector.load %arg6[%c0_7, %c0_8] : memref<32x64xf32, #tpu.memory_space<vmem>>, vector<32x64xf32>
    tpu.vector_store %arg6[%c0_7, %c0_8], %7 {strides = array<i32>} : memref<32x64xf32, #tpu.memory_space<vmem>>, vector<32x64xf32>,
    return
  }
  func.func @transform_0(%arg0: i32, %arg1: i32) -> (i32, i32) {
    %c0_i32 = arith.constant 0 : i32
    %c0_i32_0 = arith.constant 0 : i32
    return %arg0, %c0_i32 : i32, i32
  }
  func.func @transform_1(%arg0: i32, %arg1: i32) -> (i32, i32) {
    %c0_i32 = arith.constant 0 : i32
    %c0_i32_0 = arith.constant 0 : i32
    return %c0_i32, %arg1 : i32, i32
  }
  func.func @transform_2(%arg0: i32, %arg1: i32) -> (i32, i32) {
    %c0_i32 = arith.constant 0 : i32
    %c0_i32_0 = arith.constant 0 : i32
    return %c0_i32, %arg1 : i32, i32
  }
  func.func @transform_3(%arg0: i32, %arg1: i32) -> (i32, i32) {
    %c0_i32 = arith.constant 0 : i32
    return %arg0, %arg1 : i32, i32
  }
  func.func @transform_4(%arg0: i32, %arg1: i32) -> (i32, i32) {
    %c0_i32 = arith.constant 0 : i32
    return %arg0, %arg1 : i32, i32
  }
}

module attributes {stable_mosaic.version = 11 : i64} {
  func.func @_ln_matmul_kernel(%arg0: i32, %arg1: i32, %arg2: memref<32x64xf32, #tpu.memory_space<vmem>>, %arg3: memref<1x64xf32, #tpu.memory_space<vmem>>, %arg4: memref<1x64xf32, #tpu.memory_space<vmem>>, %arg5: memref<64x192xf32, #tpu.memory_space<vmem>>, %arg6: memref<1x192xf32, #tpu.memory_space<vmem>>, %arg7: memref<32x192xf32, #tpu.memory_space<vmem>>) attributes {dimension_semantics = [#tpu.dimension_semantics<parallel>, #tpu.dimension_semantics<parallel>], iteration_bounds = array<i64: 1, 1>, scalar_prefetch = 0 : i64, scratch_operands = 0 : i64, tpu.core_type = #tpu.core_type<tc>, window_params = [{transform_indices = @transform_0, window_bounds = array<i64: 32, 64>}, {pipeline_mode = #tpu.pipeline_mode<synchronous>, transform_indices = @transform_1, window_bounds = array<i64: 1, 64>}, {pipeline_mode = #tpu.pipeline_mode<synchronous>, transform_indices = @transform_2, window_bounds = array<i64: 1, 64>}, {transform_indices = @transform_3, window_bounds = array<i64: 64, 192>}, {transform_indices = @transform_4, window_bounds = array<i64: 1, 192>}, {transform_indices = @transform_5, window_bounds = array<i64: 32, 192>}]} {
    %c0 = arith.constant 0 : index
    %c0_0 = arith.constant 0 : index
    %0 = vector.load %arg2[%c0, %c0_0] : memref<32x64xf32, #tpu.memory_space<vmem>>, vector<32x64xf32>
    %cst = arith.constant dense<0.000000e+00> : vector<32xf32>
    %1 = vector.multi_reduction <add>, %0, %cst [1] : vector<32x64xf32> to vector<32xf32>
    %2 = vector.shape_cast %1 : vector<32xf32> to vector<32x1xf32>
    %cst_1 = arith.constant 6.400000e+01 : f32
    %3 = vector.broadcast %cst_1 : f32 to vector<32x1xf32>
    %4 = arith.divf %2, %3 : vector<32x1xf32>
    %5 = vector.broadcast %4 : vector<32x1xf32> to vector<32x64xf32>
    %6 = arith.subf %0, %5 : vector<32x64xf32>
    %7 = arith.mulf %6, %6 : vector<32x64xf32>
    %cst_2 = arith.constant dense<0.000000e+00> : vector<32xf32>
    %8 = vector.multi_reduction <add>, %7, %cst_2 [1] : vector<32x64xf32> to vector<32xf32>
    %9 = vector.shape_cast %8 : vector<32xf32> to vector<32x1xf32>
    %cst_3 = arith.constant 6.400000e+01 : f32
    %10 = vector.broadcast %cst_3 : f32 to vector<32x1xf32>
    %11 = arith.divf %9, %10 : vector<32x1xf32>
    %cst_4 = arith.constant 9.99999974E-6 : f32
    %12 = vector.broadcast %cst_4 : f32 to vector<32x1xf32>
    %13 = arith.addf %11, %12 : vector<32x1xf32>
    %14 = math.rsqrt %13 : vector<32x1xf32>
    %15 = vector.broadcast %14 : vector<32x1xf32> to vector<32x64xf32>
    %16 = arith.mulf %6, %15 : vector<32x64xf32>
    %c0_5 = arith.constant 0 : index
    %c0_6 = arith.constant 0 : index
    %17 = vector.load %arg3[%c0_5, %c0_6] : memref<1x64xf32, #tpu.memory_space<vmem>>, vector<1x64xf32>
    %18 = vector.broadcast %17 : vector<1x64xf32> to vector<32x64xf32>
    %19 = arith.mulf %16, %18 : vector<32x64xf32>
    %c0_7 = arith.constant 0 : index
    %c0_8 = arith.constant 0 : index
    %20 = vector.load %arg4[%c0_7, %c0_8] : memref<1x64xf32, #tpu.memory_space<vmem>>, vector<1x64xf32>
    %21 = vector.broadcast %20 : vector<1x64xf32> to vector<32x64xf32>
    %22 = arith.addf %19, %21 : vector<32x64xf32>
    %c0_9 = arith.constant 0 : index
    %c0_10 = arith.constant 0 : index
    %23 = vector.load %arg5[%c0_9, %c0_10] : memref<64x192xf32, #tpu.memory_space<vmem>>, vector<64x192xf32>
    %cst_11 = arith.constant dense<0.000000e+00> : vector<32x192xf32>
    %24 = tpu.matmul %22, %23, %cst_11 {dimension_numbers = #tpu.dot_dimension_numbers<[1], [0], [0], [1], [0, 0, 1, 1], [], []>} : vector<32x64xf32>, vector<64x192xf32>, vector<32x192xf32> -> vector<32x192xf32>
    %c0_12 = arith.constant 0 : index
    %c0_13 = arith.constant 0 : index
    %25 = vector.load %arg6[%c0_12, %c0_13] : memref<1x192xf32, #tpu.memory_space<vmem>>, vector<1x192xf32>
    %26 = vector.broadcast %25 : vector<1x192xf32> to vector<32x192xf32>
    %27 = arith.addf %24, %26 : vector<32x192xf32>
    %c0_14 = arith.constant 0 : index
    %c0_15 = arith.constant 0 : index
    %28 = vector.load %arg7[%c0_14, %c0_15] : memref<32x192xf32, #tpu.memory_space<vmem>>, vector<32x192xf32>
    tpu.vector_store %arg7[%c0_14, %c0_15], %27 {strides = array<i32>} : memref<32x192xf32, #tpu.memory_space<vmem>>, vector<32x192xf32>,
    return
  }
  func.func @transform_0(%arg0: i32, %arg1: i32) -> (i32, i32) {
    %c0_i32 = arith.constant 0 : i32
    %c0_i32_0 = arith.constant 0 : i32
    return %arg0, %c0_i32 : i32, i32
  }
  func.func @transform_1(%arg0: i32, %arg1: i32) -> (i32, i32) {
    %c0_i32 = arith.constant 0 : i32
    %c0_i32_0 = arith.constant 0 : i32
    %c0_i32_1 = arith.constant 0 : i32
    return %c0_i32, %c0_i32_0 : i32, i32
  }
  func.func @transform_2(%arg0: i32, %arg1: i32) -> (i32, i32) {
    %c0_i32 = arith.constant 0 : i32
    %c0_i32_0 = arith.constant 0 : i32
    %c0_i32_1 = arith.constant 0 : i32
    return %c0_i32, %c0_i32_0 : i32, i32
  }
  func.func @transform_3(%arg0: i32, %arg1: i32) -> (i32, i32) {
    %c0_i32 = arith.constant 0 : i32
    %c0_i32_0 = arith.constant 0 : i32
    return %c0_i32, %arg1 : i32, i32
  }
  func.func @transform_4(%arg0: i32, %arg1: i32) -> (i32, i32) {
    %c0_i32 = arith.constant 0 : i32
    %c0_i32_0 = arith.constant 0 : i32
    return %c0_i32, %arg1 : i32, i32
  }
  func.func @transform_5(%arg0: i32, %arg1: i32) -> (i32, i32) {
    %c0_i32 = arith.constant 0 : i32
    return %arg0, %arg1 : i32, i32
  }
}

</mosaic_0001>

<bundles_post_ra>
// kernel: transformer_forward.10
= control target key start
LH: loop header
LB: loop body
LE: loop exit
PB: predicated region body
PF: predicated region fallthrough
CT: control target
= control target key end

     0   :  { %10 = vsyncpa [#allocation3], 0  ;;  %s322_s18 = smov [#allocation2]   ;;  %s449_s0 = inlined_call_operand.vmem [shape: f32[32,64], index: 0, kind: input, shape index: {}]   ;;  %s450_s1 = inlined_call_operand.vmem [shape: f32[1,64], index: 1, kind: input, shape index: {}]   ;;  %s451_s2 = inlined_call_operand.vmem [shape: f32[1,64], index: 2, kind: input, shape index: {}]   ;;  %s452_s3 = inlined_call_operand.hbm [shape: f32[64,192], index: 3, kind: input, shape index: {}]   ;;  %s453_s4 = inlined_call_operand.vmem [shape: f32[1,192], index: 4, kind: input, shape index: {}]   ;;  %s454_s5 = inlined_call_operand.vmem [shape: f32[32,192], index: 5, kind: output, shape index: {}]  }
   0x1   :  { %s22_s19 = sshll.u32 %s322_s18, 4  ;;  %s298_s22 = scalar_lea.hbm %s452_s3, 2048  ;;  %s23_s19 = int_to_ptr.vmem [resolvable:$true] %s22_s19 }
   0x2   :  { %p299_p0 = scmp.ne.s32.totalorder %s452_s3, %s298_s22  ;;  %p302_p1 = scmp.lt.u32.totalorder %s298_s22, %s452_s3 }
   0x4   :  { %p304_p2 = pnand %p302_p1, %p299_p0 }
   0x6   :  { %307 = shalt.err (!%p304_p2)
}
   0x7   :  { %s308_s27 = scalar_lea.vmem %s23_s19, 2048  ;;  %p313_p4 = scmp.lt.s32.totalorder %s23_s19, %s23_s19 }
   0x8   :  { %p309_p3 = scmp.ne.s32.totalorder %s23_s19, %s308_s27  ;;  %p314_p5 = scmp.lt.s32.totalorder %s308_s27, %s308_s27 }
   0xa   :  { %p315_p6 = por %p314_p5, %p313_p4 }
   0xc   :  { %p316_p7 = pnand %p315_p6, %p309_p3 }
   0xe   :  { %319 = shalt.err (!%p316_p7)
}
   0xf   :  { %s323_s28 = smov 256   ;;  %s324_s29 = smov 16  }
  0x10   :  { %28 = dma.hbm_to_vmem [thread:$0]  %s452_s3, 2048, %s23_s19, [#allocation3], %s323_s28, %s323_s28, %s324_s29  }
  0x11   :  { %320 = dma.done.wait [#allocation3], 2048  }
  0x12   :  { %321 = vsyncadd [#allocation3], 4294965248  ;;  %vm38_vm0 = vcmask 523264   ;;  %v34_v0 = vld [vmem:[%s449_s0] sm:$0xff]  ;;  %v35_v1 = vld [vmem:[%s449_s0 + $0x8] sm:$0xff]  ;;  %v325_v50 = vmov 0.0  }
  0x13   :  { %v36_v2 = vld [vmem:[%s449_s0 + $0x10] sm:$0xff]  ;;  %v39_v3 = vsel %vm38_vm0, %v34_v0, 0.0  ;;  %v42_v4 = vsel %vm38_vm0, %v35_v1, 0.0  ;;  %v37_v5 = vld [vmem:[%s449_s0 + $0x18] sm:$0xff]  ;;  %v115_v28 = vld [vmem:[#allocation2 + $0x8] sm:$0xff]  ;;  %218 = vmatprep.mubr.f32.mxu0 %v325_v50  ;;  %230 = vmatprep.mubr.f32.mxu1 %v325_v50 }
  0x14   :  { %40 = vadd.xlane.f32.xlu0 %v39_v3  ;;  %43 = vadd.xlane.f32.xlu1 %v42_v4  ;;  %v45_v6 = vsel %vm38_vm0, %v36_v2, 0.0  ;;  %v48_v7 = vsel %vm38_vm0, %v37_v5, 0.0  ;;  %v117_v29 = vld [vmem:[#allocation2 + $0x18] sm:$0xff]  ;;  %v114_v31 = vld [vmem:[#allocation2] sm:$0xff]  ;;  %v116_v32 = vld [vmem:[#allocation2 + $0x10] sm:$0xff] }
  0x15   :  { %v262_v30 = vpack.c.bf16 %v117_v29, %v115_v28  ;;  %v264_v33 = vpack.c.bf16 %v116_v32, %v114_v31  ;;  %v119_v34 = vld [vmem:[#allocation2 + $0x28] sm:$0xff]  ;;  %v121_v35 = vld [vmem:[#allocation2 + $0x38] sm:$0xff]  ;;  %v118_v37 = vld [vmem:[#allocation2 + $0x20] sm:$0xff] }
  0x16   :  { %v266_v36 = vpack.c.bf16 %v121_v35, %v119_v34  ;;  %v120_v38 = vld [vmem:[#allocation2 + $0x30] sm:$0xff]  ;;  %v123_v40 = vld [vmem:[#allocation2 + $0x48] sm:$0xff]  ;;  %v125_v41 = vld [vmem:[#allocation2 + $0x58] sm:$0xff] }
  0x17   :  { %263 = vmatprep.subr.bf16.mxu0 %v262_v30  ;;  %278 = vmatprep.subr.bf16.mxu1 %v262_v30  ;;  %v268_v39 = vpack.c.bf16 %v120_v38, %v118_v37  ;;  %v270_v42 = vpack.c.bf16 %v125_v41, %v123_v40  ;;  %v122_v43 = vld [vmem:[#allocation2 + $0x40] sm:$0xff]  ;;  %v124_v44 = vld [vmem:[#allocation2 + $0x50] sm:$0xff]  ;;  %v127_v45 = vld [vmem:[#allocation2 + $0x68] sm:$0xff] }
  0x18   :  { %46 = vadd.xlane.f32.xlu0 %v45_v6  ;;  %49 = vadd.xlane.f32.xlu1 %v48_v7  ;;  %v272_v46 = vpack.c.bf16 %v124_v44, %v122_v43  ;;  %v129_v47 = vld [vmem:[#allocation2 + $0x78] sm:$0xff]  ;;  %v126_v48 = vld [vmem:[#allocation2 + $0x60] sm:$0xff]  ;;  %v128_v49 = vld [vmem:[#allocation2 + $0x70] sm:$0xff] }
  0x19   :  { %265 = vmatpush1.bf16.msra.mxu0 %v264_v33  ;;  %282 = vmatpush1.bf16.msra.mxu1 %v264_v33  ;;  %v274_v51 = vpack.c.bf16 %v129_v47, %v127_v45  ;;  %v276_v52 = vpack.c.bf16 %v128_v49, %v126_v48  ;;  %v257_v4 = vld [vmem:[%s451_s2] ss:$0 sm:$0xff] }
  0x1a   :  { %267 = vmatprep.subr.bf16.mxu0 %v266_v36  ;;  %279 = vmatprep.subr.bf16.mxu1 %v266_v36 }
  0x1d   :  { %269 = vmatpush1.bf16.msra.mxu0 %v268_v39  ;;  %283 = vmatpush1.bf16.msra.mxu1 %v268_v39 }
  0x1e   :  { %271 = vmatprep.subr.bf16.mxu0 %v270_v42  ;;  %280 = vmatprep.subr.bf16.mxu1 %v270_v42 }
  0x21   :  { %273 = vmatpush1.bf16.msra.mxu0 %v272_v46  ;;  %284 = vmatpush1.bf16.msra.mxu1 %v272_v46 }
  0x22   :  { %275 = vmatprep.subr.bf16.mxu0 %v274_v51  ;;  %281 = vmatprep.subr.bf16.mxu1 %v274_v51 }
  0x25   :  { %277 = vmatpush1.bf16.msra.mxu0 %v276_v52  ;;  %285 = vmatpush1.bf16.msra.mxu1 %v276_v52 }
  0xa1   :  { %v41_v8 = vpop.xlane.xlu0 %40  ;;  %v44_v9 = vpop.xlane.xlu1 %43 }
  0xa2   :  { %v52_v10 = vmul.f32 0.015625, %v41_v8  ;;  %v53_v11 = vmul.f32 0.015625, %v44_v9 }
  0xa4   :  { %v384_v12 = vsub.f32 %v34_v0, %v52_v10  ;;  %v386_v13 = vsub.f32 %v35_v1, %v53_v11 }
  0xa5   :  { %v47_v14 = vpop.xlane.xlu0 %46  ;;  %v50_v15 = vpop.xlane.xlu1 %49 }
  0xa6   :  { %v54_v16 = vmul.f32 0.015625, %v47_v14  ;;  %v55_v17 = vmul.f32 0.015625, %v50_v15  ;;  %v60_v18 = vmul.f32 %v384_v12, %v384_v12  ;;  %v61_v19 = vmul.f32 %v386_v13, %v386_v13 }
  0xa8   :  { %v392_v20 = vsub.f32 %v36_v2, %v54_v16  ;;  %v394_v21 = vsub.f32 %v37_v5, %v55_v17  ;;  %v64_v22 = vsel %vm38_vm0, %v60_v18, 0.0  ;;  %v67_v23 = vsel %vm38_vm0, %v61_v19, 0.0  ;;  %v256_v2 = vld [vmem:[%s450_s1] ss:$0 sm:$0xff] }
  0xa9   :  { %65 = vadd.xlane.f32.xlu0 %v64_v22 }
  0xaa   :  { %v62_v24 = vmul.f32 %v392_v20, %v392_v20  ;;  %v63_v25 = vmul.f32 %v394_v21, %v394_v21 }
  0xac   :  { %v70_v26 = vsel %vm38_vm0, %v62_v24, 0.0  ;;  %v73_v27 = vsel %vm38_vm0, %v63_v25, 0.0 }
  0xad   :  { %68 = vadd.xlane.f32.xlu0 %v67_v23  ;;  %71 = vadd.xlane.f32.xlu1 %v70_v26  ;;  %v130_v23 = vld [vmem:[%s453_s4] sm:$0x3] }
  0xb1   :  { %74 = vadd.xlane.f32.xlu1 %v73_v27 }
 0x136   :  { %v66_v53 = vpop.xlane.xlu0 %65 }
 0x137   :  { %v76_v54 = vmul.f32 0.015625, %v66_v53 }
 0x139   :  { %v80_v55 = vadd.f32 1e-05, %v76_v54 }
 0x13a   :  { %v72_v56 = vpop.xlane.xlu1 %71  ;;  %v69_v57 = vpop.xlane.xlu0 %68 }
 0x13b   :  { %290 = vrsqrt.f32 %v80_v55  ;;  %v78_v58 = vmul.f32 0.015625, %v72_v56  ;;  %v77_v59 = vmul.f32 0.015625, %v69_v57 }
 0x13d   :  { %v82_v60 = vadd.f32 1e-05, %v78_v58  ;;  %v81_v61 = vadd.f32 1e-05, %v77_v59 }
 0x13e   :  { %v75_v62 = vpop.xlane.xlu1 %74 }
 0x13f   :  { %292 = vrsqrt.f32 %v82_v60  ;;  %v79_v63 = vmul.f32 0.015625, %v75_v62 }
 0x140   :  { %294 = vrsqrt.f32 %v81_v61 }
 0x141   :  { %v83_v0 = vadd.f32 1e-05, %v79_v63 }
 0x143   :  { %296 = vrsqrt.f32 %v83_v0 }
 0x145   :  { %v291_v1 = vpop.eup %290 }
 0x146   :  { %v88_v3 = vmul.f32 %v291_v1, %v384_v12 }
 0x148   :  { %v99_v5 = vmul.f32 %v256_v2, %v88_v3 }
 0x149   :  { %v293_v6 = vpop.eup %292 }
 0x14a   :  { %v295_v7 = vpop.eup %294  ;;  %v110_v8 = vadd.f32 %v257_v4, %v99_v5  ;;  %v90_v9 = vmul.f32 %v293_v6, %v392_v20 }
 0x14b   :  { %v89_v10 = vmul.f32 %v295_v7, %v386_v13  ;;  %v132_v13 = vlaneseq }
 0x14c   :  { %258 = vmatmul.mubr.msk.f32.vlgmr.msra.gmra.mrb[0].mxu0 %vm38_vm0, %v110_v8  ;;  %v101_v11 = vmul.f32 %v256_v2, %v90_v9 }
 0x14d   :  { %v297_v14 = vpop.eup %296  ;;  %224 = vmatprep.mubr.f32.mxu0 %v325_v50  ;;  %v100_v15 = vmul.f32 %v256_v2, %v89_v10  ;;  %v133_v20 = vshrl.u32 %v132_v13, 7 }
 0x14e   :  { %v112_v16 = vadd.f32 %v257_v4, %v101_v11  ;;  %v91_v12 = vmul.f32 %v297_v14, %v394_v21 }
 0x14f   :  { %v111_v17 = vadd.f32 %v257_v4, %v100_v15  ;;  %v134_v22 = vsub.s32 0, %v133_v20  ;;  %v138_v24 = vsub.s32 1, %v133_v20 }
 0x150   :  { %260 = vmatmul.mubr.msk.f32.vlgmr.msra.gmra.mrb[0].mxu1 %vm38_vm0, %v112_v16  ;;  %v102_v18 = vmul.f32 %v256_v2, %v91_v12 }
 0x151   :  { %259 = vmatmul.mubr.msk.f32.gmra.mrb[2].mxu0 %vm38_vm0, %v111_v17  ;;  %236 = vmatprep.mubr.f32.mxu1 %v325_v50  ;;  %v135_v25 = vrot.slane %v130_v23, %v134_v22  ;;  %v139_v21 = vrot.slane %v130_v23, %v138_v24 }
 0x152   :  { %v113_v19 = vadd.f32 %v257_v4, %v102_v18 }
 0x154   :  { %261 = vmatmul.mubr.msk.f32.gmra.mrb[2].mxu1 %vm38_vm0, %v113_v19 }
 0x21f   :  { %v220_v26 = vpop.f32.mrb[0].mxu0 }
 0x220   :  { %v221_v27 = vadd.f32 %v220_v26, %v135_v25  ;;  %v222_v28 = vpop.f32.mrb[1].mxu0 }
 0x221   :  { %v223_v29 = vadd.f32 %v222_v28, %v139_v21 }
 0x222   :  { %243 = vst [vmem:[%s454_s5] sm:$0xff] %v221_v27 }
 0x223   :  { %244 = vst.msk [vmem:[%s454_s5 + $0x8] sm:$0xff] %vm38_vm0, %v223_v29  ;;  %v232_v30 = vpop.f32.mrb[0].mxu1 }
 0x224   :  { %v226_v31 = vpop.f32.mrb[2].mxu0  ;;  %v233_v32 = vadd.f32 %v232_v30, %v135_v25  ;;  %v234_v33 = vpop.f32.mrb[1].mxu1 }
 0x225   :  { %v227_v34 = vadd.f32 %v226_v31, %v135_v25  ;;  %v228_v35 = vpop.f32.mrb[3].mxu0  ;;  %v235_v36 = vadd.f32 %v234_v33, %v139_v21 }
 0x226   :  { %247 = vst [vmem:[%s454_s5 + $0x20] sm:$0xff] %v233_v32  ;;  %v229_v37 = vadd.f32 %v228_v35, %v139_v21 }
 0x227   :  { %245 = vst [vmem:[%s454_s5 + $0x10] sm:$0xff] %v227_v34  ;;  %248 = vst.msk [vmem:[%s454_s5 + $0x28] sm:$0xff] %vm38_vm0, %v235_v36  ;;  %v238_v38 = vpop.f32.mrb[2].mxu1 }
 0x228   :  { %246 = vst.msk [vmem:[%s454_s5 + $0x18] sm:$0xff] %vm38_vm0, %v229_v37  ;;  %v239_v39 = vadd.f32 %v238_v38, %v135_v25  ;;  %v240_v40 = vpop.f32.mrb[3].mxu1 }
 0x229   :  { %v241_v41 = vadd.f32 %v240_v40, %v139_v21 }
 0x22a   :  { %249 = vst [vmem:[%s454_s5 + $0x30] sm:$0xff] %v239_v39 }
 0x22b   :  { %250 = vst.msk [vmem:[%s454_s5 + $0x38] sm:$0xff] %vm38_vm0, %v241_v41 }
 0x22c   :  { %255 = vsyncpa [#allocation3], 1 }

// kernel: transformer_forward.12
= control target key start
LH: loop header
LB: loop body
LE: loop exit
PB: predicated region body
PF: predicated region fallthrough
CT: control target
= control target key end

     0   :  { %vm36_vm0 = vcmask 523264   ;;  %s309_s1 = inlined_call_operand.vmem [shape: f32[64,64], index: 1, kind: input, shape index: {}]   ;;  %s310_s0 = inlined_call_operand.vmem [shape: f32[32,64], index: 0, kind: input, shape index: {}]   ;;  %s311_s2 = inlined_call_operand.vmem [shape: f32[1,64], index: 2, kind: input, shape index: {}]   ;;  %s312_s3 = inlined_call_operand.vmem [shape: f32[32,64], index: 3, kind: input, shape index: {}]   ;;  %s313_s4 = inlined_call_operand.vmem [shape: f32[32,64], index: 4, kind: output, shape index: {}]  }
   0x1   :  { %v21_v0 = vld [vmem:[%s309_s1] sm:$0xff]  ;;  %v22_v1 = vld [vmem:[%s309_s1 + $0x8] sm:$0xff]  ;;  %v23_v2 = vld [vmem:[%s309_s1 + $0x10] sm:$0xff] }
   0x2   :  { %v189_v3 = vpack.c.bf16 %v22_v1, %v21_v0  ;;  %v24_v4 = vld [vmem:[%s309_s1 + $0x18] sm:$0xff]  ;;  %v25_v6 = vld [vmem:[%s309_s1 + $0x20] sm:$0xff]  ;;  %v26_v7 = vld [vmem:[%s309_s1 + $0x28] sm:$0xff] }
   0x3   :  { %v193_v5 = vpack.c.bf16 %v24_v4, %v23_v2  ;;  %v17_v8 = vld [vmem:[%s310_s0] sm:$0xff]  ;;  %v19_v9 = vld [vmem:[%s310_s0 + $0x10] sm:$0xff]  ;;  %v197_v10 = vpack.c.bf16 %v26_v7, %v25_v6  ;;  %v28_v12 = vld [vmem:[%s309_s1 + $0x38] sm:$0xff] }
   0x4   :  { %190 = vmatprep.subr.bf16.mxu0 %v189_v3  ;;  %205 = vmatprep.subr.bf16.mxu1 %v189_v3  ;;  %v27_v11 = vld [vmem:[%s309_s1 + $0x30] sm:$0xff]  ;;  %v18_v14 = vld [vmem:[%s310_s0 + $0x8] sm:$0xff]  ;;  %v20_v15 = vld [vmem:[%s310_s0 + $0x18] sm:$0xff] }
   0x5   :  { %192 = vmatpush3.bf16.msra.mxu0 %v189_v3  ;;  %209 = vmatpush3.bf16.msra.mxu1 %v189_v3  ;;  %v201_v13 = vpack.c.bf16 %v28_v12, %v27_v11  ;;  %v150_v16 = vld [vmem:[%s311_s2] ss:$0 sm:$0xff]  ;;  %v135_v18 = vld [vmem:[%s312_s3 + $0x8] sm:$0xff]  ;;  %v137_v20 = vld [vmem:[%s312_s3 + $0x18] sm:$0xff] }
   0x6   :  { %194 = vmatprep.subr.bf16.mxu0 %v193_v5  ;;  %206 = vmatprep.subr.bf16.mxu1 %v193_v5  ;;  %v134_v24 = vld [vmem:[%s312_s3] sm:$0xff]  ;;  %v136_v26 = vld [vmem:[%s312_s3 + $0x10] sm:$0xff] }
   0x7   :  { %183 = vmatprep.mubr.msk.f32.mxu0 %vm36_vm0, %v17_v8  ;;  %186 = vmatprep.mubr.msk.f32.mxu1 %vm36_vm0, %v19_v9 }
   0x9   :  { %196 = vmatpush3.bf16.msra.mxu0 %v193_v5  ;;  %210 = vmatpush3.bf16.msra.mxu1 %v193_v5 }
   0xa   :  { %198 = vmatprep.subr.bf16.mxu0 %v197_v10  ;;  %207 = vmatprep.subr.bf16.mxu1 %v197_v10 }
   0xd   :  { %200 = vmatpush3.bf16.msra.mxu0 %v197_v10  ;;  %211 = vmatpush3.bf16.msra.mxu1 %v197_v10 }
   0xe   :  { %202 = vmatprep.subr.bf16.mxu0 %v201_v13  ;;  %208 = vmatprep.subr.bf16.mxu1 %v201_v13 }
  0x11   :  { %204 = vmatpush3.bf16.msra.mxu0 %v201_v13  ;;  %212 = vmatpush3.bf16.msra.mxu1 %v201_v13 }
  0x14   :  { %184 = vmatmul.mubr.msk.f32.vlgmr.msra.gmra.mrb[0].mxu0 %vm36_vm0, %v18_v14  ;;  %187 = vmatmul.mubr.msk.f32.vlgmr.msra.gmra.mrb[0].mxu1 %vm36_vm0, %v20_v15 }
  0xe7   :  { %v185_v17 = vpop.f32.mrb[0].mxu0  ;;  %v188_v19 = vpop.f32.mrb[0].mxu1 }
  0xe8   :  { %v121_v21 = vadd.f32 %v185_v17, %v150_v16  ;;  %v131_v22 = vadd.f32 %v188_v19, %v150_v16  ;;  %v115_v23 = vpop.f32.mrb[1].mxu0  ;;  %v125_v25 = vpop.f32.mrb[1].mxu1 }
  0xe9   :  { %v116_v27 = vadd.f32 %v150_v16, %v115_v23  ;;  %v126_v28 = vadd.f32 %v150_v16, %v125_v25 }
  0xea   :  { %v139_v29 = vadd.f32 %v135_v18, %v121_v21  ;;  %v141_v30 = vadd.f32 %v137_v20, %v131_v22 }
  0xeb   :  { %v138_v31 = vadd.f32 %v134_v24, %v116_v27  ;;  %v140_v32 = vadd.f32 %v136_v26, %v126_v28 }
  0xec   :  { %143 = vst.msk [vmem:[%s313_s4 + $0x8] sm:$0xff] %vm36_vm0, %v139_v29  ;;  %145 = vst.msk [vmem:[%s313_s4 + $0x18] sm:$0xff] %vm36_vm0, %v141_v30 }
  0xed   :  { %142 = vst.msk [vmem:[%s313_s4] sm:$0xff] %vm36_vm0, %v138_v31  ;;  %144 = vst.msk [vmem:[%s313_s4 + $0x10] sm:$0xff] %vm36_vm0, %v140_v32 }

// kernel: transformer_forward.11
= control target key start
LH: loop header
LB: loop body
LE: loop exit
PB: predicated region body
PF: predicated region fallthrough
CT: control target
= control target key end

     0   :  { %s1286_s6 = smov 0   ;;  %s1418_s0 = inlined_call_operand.vmem [shape: f32[2,16,192], index: 0, kind: input, shape index: {}]   ;;  %s1419_s1 = inlined_call_operand.vmem [shape: f32[2,16,64], index: 1, kind: output, shape index: {}]  }
   0x1 LB: > { %s1014_s7 = sadd.s32 4294967295, %s1267_s6   ;;  %p1018_p0 = scmp.ge.s32.totalorder %s1267_s6, 1  ;;  %s1267_s6 = sphi %s1286_s6, %s11_s6  }
   0x2   : > { %p87_p1 = scmp.lt.s32.totalorder %s1267_s6, 3 }
   0x4   : > { %p88_p2 = pnand %p1018_p0, %p87_p1 }
   0x5   : > { %p107_p3 = scmp.lt.s32.totalorder (!%p88_p2), %s1014_s7, 1  ;;  %vm127_vm0 = vcmask (!%p88_p2), 130048   ;;  %s1269_s12 = smov (!%p88_p2), 64   ;;  %vm950_vm2 = vcmask (!%p88_p2), 261120   ;;  %vm953_vm3 = vcmask (!%p88_p2), 392192   ;;  %vm956_vm4 = vcmask (!%p88_p2), 523264  }
   0x6   : > { %91 = sbr.rel (%p88_p2) target bundleno = 2629 (0xa45), region = 24  ;;  %vm1313_vm1 = vmpackc.low (!%p88_p2), %vm127_vm0, %vm127_vm0  ;;  %s1270_s13 = smov (!%p88_p2), 48  }
   0x7   : > { %s1271_s14 = smov (!%p88_p2), 112   ;;  %s1272_s15 = smov (!%p88_p2), 96  }
   0x8   : > { %s1273_s16 = smov (!%p88_p2), 32   ;;  %s1274_s17 = smov (!%p88_p2), 16  }
   0x9   : > { %s1275_s18 = smov (!%p88_p2), 80  }
   0xd   : > { %s1423_s7 = smov (!%p107_p3, %s1014_s7), 1 }
   0xe   : > { %s1049_s8 = sshll.u32 %s1423_s7, 5  ;;  %s1050_s19 = sshll.u32 %s1423_s7, 4 }
   0xf   : > { %s111_s11 = scalar_lea.vmem %s1418_s0, %s1049_s8  ;;  %s116_s22 = scalar_lea.vmem %s1419_s1, %s1050_s19 }
  0x10   : > { %v1300_v0 = vld [vmem:[%s111_s11] sm:$0xff]  ;;  %v1302_v1 = vld [vmem:[%s111_s11 + $0x10] sm:$0xff]  ;;  %v118_v14 = vld [vmem:[%s111_s11 + $0x8] sm:$0xff] }
  0x11   : > { %v1306_v2 = vpack.i.bf16 %v1302_v1, %v1300_v0  ;;  %1087 = vmatprep.mubr.msk.f32.mxu0 %vm127_vm0, %v1300_v0  ;;  %v120_v15 = vld [vmem:[%s111_s11 + $0x18] sm:$0xff] }
  0x12   : > { %v1145_v16 = vpack.c.bf16 %v120_v15, %v118_v14  ;;  %v1347_v47 = vpack.i.bf16 %v120_v15, %v118_v14 }
  0x13   : > { %1195 = vrot.lane.b32.xlu0 %v1306_v2, %s1269_s12 }
  0x14   : > { %1146 = vmatprep.subr.bf16.mxu1 %v1145_v16 }
  0x15   : > { %1148 = vmatpush3.bf16.msra.mxu1 %v1145_v16 }
  0x85   : > { %v1196_v3 = vpop.permute.xlu0 %1195 }
  0x86   : > { %v1198_v4 = vunpack.i.h.bf16 %v1196_v3  ;;  %v1197_v5 = vunpack.i.l.bf16 %v1196_v3 }
  0x88   : > { %v1139_v7 = vpack.c.bf16 %v1198_v4, %v1197_v5 }
  0x8a   : > { %1141 = vmatprep.subr.msk.bf16.mxu0 %vm1313_vm1, %v1139_v7 }
  0x8b   : > { %1144 = vmatpush3.bf16.xpose.msk.msra.mxu0 %vm1313_vm1, %v1139_v7 }
  0x92   : > { %1088 = vmatmul.mubr.msk.f32.vlgmr.msra.gmra.mrb[0].mxu0 %vm127_vm0, %v1302_v1 }
 0x165   : > { %v1089_v8 = vpop.f32.mrb[0].mxu0 }
 0x166   : > { %v212_v9 = vmul.f32 0.25, %v1089_v8  ;;  %v202_v10 = vpop.f32.mrb[1].mxu0 }
 0x167   : > { %v211_v11 = vmul.f32 0.25, %v202_v10 }
 0x168   : > { %v216_v12 = vsel %vm127_vm0, %v212_v9, -inf }
 0x169   : > { %217 = vmax.xlane.f32.xlu1 %v216_v12  ;;  %v213_v13 = vsel %vm127_vm0, %v211_v11, -inf }
 0x16a   : > { %214 = vmax.xlane.f32.xlu0 %v213_v13 }
 0x17a   : > { %1200 = vrot.lane.b32.xlu1 %v1306_v2, %s1270_s13 }
 0x17e   : > { %316 = vrot.lane.b32.xlu1 %v1300_v0, %s1271_s14 }
 0x1f6   : > { %v218_v17 = vpop.xlane.xlu1 %217 }
 0x1f7   : > { %v220_v18 = vsub.f32 %v212_v9, %v218_v17  ;;  %v215_v19 = vpop.xlane.xlu0 %214 }
 0x1f8   : > { %v219_v20 = vsub.f32 %v211_v11, %v215_v19 }
 0x1f9   : > { %v223_v21 = vmul.f32 1.442695, %v220_v18 }
 0x1fa   : > { %v221_v22 = vmul.f32 1.442695, %v219_v20  ;;  %v1201_v23 = vpop.permute.xlu1 %1200 }
 0x1fb   : > { %1229 = vpow2.f32 %v223_v21  ;;  %v1203_v24 = vunpack.i.h.bf16 %v1201_v23  ;;  %v1202_v25 = vunpack.i.l.bf16 %v1201_v23 }
 0x1fc   : > { %1231 = vpow2.f32 %v221_v22 }
 0x1fd   : > { %v1149_v26 = vpack.c.bf16 %v1203_v24, %v1202_v25 }
 0x1fe   : > { %v317_v31 = vpop.permute.xlu1 %316 }
 0x1ff   : > { %1151 = vmatprep.subr.msk.bf16.mxu1 %vm1313_vm1, %v1149_v26 }
 0x205   : > { %v1230_v27 = vpop.eup %1229 }
 0x206   : > { %v228_v28 = vsel %vm127_vm0, %v1230_v27, 0.0  ;;  %v1232_v29 = vpop.eup %1231 }
 0x207   : > { %229 = vadd.xlane.f32.xlu1 %v228_v28  ;;  %v225_v30 = vsel %vm127_vm0, %v1232_v29, 0.0 }
 0x20b   : > { %226 = vadd.xlane.f32.xlu1 %v225_v30 }
 0x21c   : > { %318 = vrot.lane.b32.xlu1 %v1302_v1, %s1271_s14 }
 0x294   : > { %v230_v32 = vpop.xlane.xlu1 %229 }
 0x295   : > { %1233 = vrcp.f32 %v230_v32 }
 0x298   : > { %v227_v33 = vpop.xlane.xlu1 %226 }
 0x299   : > { %1235 = vrcp.f32 %v227_v33 }
 0x29c   : > { %v319_v38 = vpop.permute.xlu1 %318 }
 0x29f   : > { %v1234_v34 = vpop.eup %1233 }
 0x2a0   : > { %v234_v37 = vmul.f32 %v1234_v34, %v1230_v27 }
 0x2a3   : > { %v1236_v35 = vpop.eup %1235 }
 0x2a4   : > { %v232_v36 = vmul.f32 %v1236_v35, %v1232_v29 }
 0x2a6   : > { %1094 = vmatprep.mubr.msk.f32.mxu1 %vm127_vm0, %v232_v36 }
 0x2a7   : > { %1095 = vmatmul.mubr.msk.f32.vlgmr.msra.gmra.mrb[0].mxu1 %vm127_vm0, %v234_v37 }
 0x2a8   : > { %1154 = vmatpush3.bf16.xpose.msk.msra.mxu1 %vm1313_vm1, %v1149_v26  ;;  %1101 = vmatprep.mubr.msk.f32.mxu1 %vm127_vm0, %v317_v31 }
 0x2af   : > { %1102 = vmatmul.mubr.msk.f32.vlgmr.msra.gmra.mrb[2].mxu1 %vm127_vm0, %v319_v38 }
 0x37a   : > { %v1341_v39 = vpop.f32.mrb[0].mxu1 }
 0x37b   : > { %v1343_v40 = vpop.f32.mrb[1].mxu1 }
 0x382   : > { %v1103_v41 = vpop.f32.mrb[2].mxu1 }
 0x383   : > { %v408_v42 = vmul.f32 0.25, %v1103_v41  ;;  %v398_v43 = vpop.f32.mrb[3].mxu1 }
 0x384   : > { %v407_v44 = vmul.f32 0.25, %v398_v43 }
 0x385   : > { %v412_v45 = vsel %vm127_vm0, %v408_v42, -inf }
 0x386   : > { %413 = vmax.xlane.f32.xlu1 %v412_v45  ;;  %v409_v46 = vsel %vm127_vm0, %v407_v44, -inf }
 0x387   : > { %410 = vmax.xlane.f32.xlu0 %v409_v46 }
 0x397   : > { %522 = vrot.lane.b32.xlu1 %v1302_v1, %s1272_s15 }
 0x39d   : > { %1205 = vrot.lane.b32.xlu0 %v1347_v47, %s1271_s14 }
 0x413   : > { %v414_v48 = vpop.xlane.xlu1 %413 }
 0x414   : > { %v416_v49 = vsub.f32 %v408_v42, %v414_v48  ;;  %v411_v50 = vpop.xlane.xlu0 %410 }
 0x415   : > { %v415_v51 = vsub.f32 %v407_v44, %v411_v50 }
 0x416   : > { %v419_v52 = vmul.f32 1.442695, %v416_v49 }
 0x417   : > { %v417_v53 = vmul.f32 1.442695, %v415_v51  ;;  %v523_v13 = vpop.permute.xlu1 %522 }
 0x418   : > { %1237 = vpow2.f32 %v419_v52  ;;  %v1206_v54 = vpop.permute.xlu0 %1205 }
 0x419   : > { %v1208_v55 = vunpack.i.h.bf16 %v1206_v54  ;;  %v1207_v56 = vunpack.i.l.bf16 %v1206_v54  ;;  %1239 = vpow2.f32 %v417_v53 }
 0x41b   : > { %v1155_v57 = vpack.c.bf16 %v1208_v55, %v1207_v56 }
 0x41d   : > { %1156 = vmatprep.subr.bf16.mxu0 %v1155_v57 }
 0x41e   : > { %1158 = vmatpush3.bf16.msra.mxu0 %v1155_v57 }
 0x422   : > { %v1238_v58 = vpop.eup %1237 }
 0x423   : > { %v424_v59 = vsel %vm127_vm0, %v1238_v58, 0.0  ;;  %v1240_v60 = vpop.eup %1239 }
 0x424   : > { %425 = vadd.xlane.f32.xlu0 %v424_v59  ;;  %v421_v61 = vsel %vm127_vm0, %v1240_v60, 0.0 }
 0x428   : > { %422 = vadd.xlane.f32.xlu0 %v421_v61 }
 0x43e   : > { %1210 = vrot.lane.b32.xlu0 %v1306_v2, %s1273_s16 }
 0x442   : > { %520 = vrot.lane.b32.xlu0 %v1300_v0, %s1272_s15 }
 0x4b1   : > { %v426_v62 = vpop.xlane.xlu0 %425 }
 0x4b2   : > { %1241 = vrcp.f32 %v426_v62 }
 0x4b5   : > { %v423_v63 = vpop.xlane.xlu0 %422 }
 0x4b6   : > { %1243 = vrcp.f32 %v423_v63 }
 0x4b9   : > { %v1211_v3 = vpop.permute.xlu0 %1210 }
 0x4ba   : > { %v1213_v4 = vunpack.i.h.bf16 %v1211_v3  ;;  %v1212_v5 = vunpack.i.l.bf16 %v1211_v3 }
 0x4bc   : > { %v1159_v7 = vpack.c.bf16 %v1213_v4, %v1212_v5  ;;  %v1242_v8 = vpop.eup %1241 }
 0x4bd   : > { %v430_v11 = vmul.f32 %v1242_v8, %v1238_v58  ;;  %v521_v12 = vpop.permute.xlu0 %520 }
 0x4be   : > { %1161 = vmatprep.subr.msk.bf16.mxu0 %vm1313_vm1, %v1159_v7 }
 0x4c0   : > { %v1244_v9 = vpop.eup %1243 }
 0x4c1   : > { %v428_v10 = vmul.f32 %v1244_v9, %v1240_v60 }
 0x4c3   : > { %1108 = vmatprep.mubr.msk.f32.mxu0 %vm127_vm0, %v428_v10 }
 0x4c4   : > { %1109 = vmatmul.mubr.msk.f32.vlgmr.msra.gmra.mrb[2].mxu0 %vm127_vm0, %v430_v11 }
 0x4c5   : > { %1164 = vmatpush3.bf16.xpose.msk.msra.mxu0 %vm1313_vm1, %v1159_v7  ;;  %1115 = vmatprep.mubr.msk.f32.mxu0 %vm127_vm0, %v521_v12 }
 0x4cc   : > { %1116 = vmatmul.mubr.msk.f32.vlgmr.msra.gmra.mrb[4].mxu0 %vm127_vm0, %v523_v13 }
 0x597   : > { %v1367_v14 = vpop.f32.mrb[2].mxu0 }
 0x598   : > { %v1369_v15 = vpop.f32.mrb[3].mxu0 }
 0x59f   : > { %v1117_v16 = vpop.f32.mrb[4].mxu0 }
 0x5a0   : > { %v612_v17 = vmul.f32 0.25, %v1117_v16  ;;  %v602_v18 = vpop.f32.mrb[5].mxu0 }
 0x5a1   : > { %v611_v19 = vmul.f32 0.25, %v602_v18 }
 0x5a2   : > { %v616_v20 = vsel %vm127_vm0, %v612_v17, -inf }
 0x5a3   : > { %617 = vmax.xlane.f32.xlu1 %v616_v20  ;;  %v613_v21 = vsel %vm127_vm0, %v611_v19, -inf }
 0x5a4   : > { %614 = vmax.xlane.f32.xlu0 %v613_v21 }
 0x5b4   : > { %1220 = vrot.lane.b32.xlu1 %v1306_v2, %s1274_s17 }
 0x5ba   : > { %1215 = vrot.lane.b32.xlu0 %v1347_v47, %s1272_s15 }
 0x630   : > { %v618_v22 = vpop.xlane.xlu1 %617 }
 0x631   : > { %v620_v23 = vsub.f32 %v612_v17, %v618_v22  ;;  %v615_v24 = vpop.xlane.xlu0 %614 }
 0x632   : > { %v619_v25 = vsub.f32 %v611_v19, %v615_v24 }
 0x633   : > { %v623_v26 = vmul.f32 1.442695, %v620_v23 }
 0x634   : > { %v621_v27 = vmul.f32 1.442695, %v619_v25  ;;  %v1221_v35 = vpop.permute.xlu1 %1220 }
 0x635   : > { %1245 = vpow2.f32 %v623_v26  ;;  %v1216_v28 = vpop.permute.xlu0 %1215  ;;  %v1223_v36 = vunpack.i.h.bf16 %v1221_v35  ;;  %v1222_v37 = vunpack.i.l.bf16 %v1221_v35 }
 0x636   : > { %v1218_v29 = vunpack.i.h.bf16 %v1216_v28  ;;  %v1217_v30 = vunpack.i.l.bf16 %v1216_v28  ;;  %1247 = vpow2.f32 %v621_v27 }
 0x637   : > { %v1169_v38 = vpack.c.bf16 %v1223_v36, %v1222_v37 }
 0x638   : > { %v1165_v31 = vpack.c.bf16 %v1218_v29, %v1217_v30 }
 0x63a   : > { %1166 = vmatprep.subr.bf16.mxu1 %v1165_v31 }
 0x63b   : > { %1168 = vmatpush3.bf16.msra.mxu1 %v1165_v31 }
 0x63c   : > { %1171 = vmatprep.subr.msk.bf16.mxu1 %vm1313_vm1, %v1169_v38 }
 0x63f   : > { %v1246_v32 = vpop.eup %1245 }
 0x640   : > { %v628_v33 = vsel %vm127_vm0, %v1246_v32, 0.0  ;;  %v1248_v34 = vpop.eup %1247 }
 0x641   : > { %629 = vadd.xlane.f32.xlu0 %v628_v33  ;;  %v625_v2 = vsel %vm127_vm0, %v1248_v34, 0.0 }
 0x645   : > { %626 = vadd.xlane.f32.xlu0 %v625_v2 }
 0x65b   : > { %722 = vrot.lane.b32.xlu0 %v1300_v0, %s1275_s18 }
 0x65f   : > { %724 = vrot.lane.b32.xlu0 %v1302_v1, %s1275_s18 }
 0x6ce   : > { %v630_v41 = vpop.xlane.xlu0 %629 }
 0x6cf   : > { %1249 = vrcp.f32 %v630_v41 }
 0x6d2   : > { %v627_v42 = vpop.xlane.xlu0 %626 }
 0x6d3   : > { %1251 = vrcp.f32 %v627_v42 }
 0x6d6   : > { %v723_v48 = vpop.permute.xlu0 %722 }
 0x6d9   : > { %v1250_v43 = vpop.eup %1249 }
 0x6da   : > { %v634_v46 = vmul.f32 %v1250_v43, %v1246_v32  ;;  %v725_v0 = vpop.permute.xlu0 %724 }
 0x6dd   : > { %v1252_v44 = vpop.eup %1251 }
 0x6de   : > { %v632_v45 = vmul.f32 %v1252_v44, %v1248_v34 }
 0x6e0   : > { %1122 = vmatprep.mubr.msk.f32.mxu1 %vm127_vm0, %v632_v45 }
 0x6e1   : > { %1123 = vmatmul.mubr.msk.f32.vlgmr.msra.gmra.mrb[4].mxu1 %vm127_vm0, %v634_v46 }
 0x6e2   : > { %1174 = vmatpush3.bf16.xpose.msk.msra.mxu1 %vm1313_vm1, %v1169_v38  ;;  %1129 = vmatprep.mubr.msk.f32.mxu1 %vm127_vm0, %v723_v48 }
 0x6e9   : > { %1130 = vmatmul.mubr.msk.f32.vlgmr.msra.gmra.mrb[6].mxu1 %vm127_vm0, %v725_v0 }
 0x7b4   : > { %v1124_v1 = vpop.f32.mrb[4].mxu1 }
 0x7b5   : > { %v713_v49 = vpop.f32.mrb[5].mxu1 }
 0x7bc   : > { %v1131_v50 = vpop.f32.mrb[6].mxu1 }
 0x7bd   : > { %v814_v51 = vmul.f32 0.25, %v1131_v50  ;;  %v804_v52 = vpop.f32.mrb[7].mxu1 }
 0x7be   : > { %v813_v53 = vmul.f32 0.25, %v804_v52 }
 0x7bf   : > { %v818_v54 = vsel %vm127_vm0, %v814_v51, -inf }
 0x7c0   : > { %819 = vmax.xlane.f32.xlu0 %v818_v54  ;;  %v815_v55 = vsel %vm127_vm0, %v813_v53, -inf }
 0x7c1   : > { %816 = vmax.xlane.f32.xlu1 %v815_v55 }
 0x84d   : > { %v820_v56 = vpop.xlane.xlu0 %819 }
 0x84e   : > { %v822_v6 = vsub.f32 %v814_v51, %v820_v56  ;;  %v817_v57 = vpop.xlane.xlu1 %816 }
 0x84f   : > { %v821_v58 = vsub.f32 %v813_v53, %v817_v57 }
 0x850   : > { %v825_v59 = vmul.f32 1.442695, %v822_v6 }
 0x851   : > { %v823_v60 = vmul.f32 1.442695, %v821_v58 }
 0x852   : > { %1253 = vpow2.f32 %v825_v59 }
 0x853   : > { %1255 = vpow2.f32 %v823_v60 }
 0x85c   : > { %v1254_v61 = vpop.eup %1253 }
 0x85d   : > { %v1256_v62 = vpop.eup %1255  ;;  %v830_v63 = vsel %vm127_vm0, %v1254_v61, 0.0 }
 0x85e   : > { %831 = vadd.xlane.f32.xlu1 %v830_v63  ;;  %v827_v3 = vsel %vm127_vm0, %v1256_v62, 0.0 }
 0x85f   : > { %828 = vadd.xlane.f32.xlu0 %v827_v3 }
 0x86f   : > { %926 = vrot.lane.b32.xlu1 %v1369_v15, %s1274_s17 }
 0x873   : > { %928 = vrot.lane.b32.xlu1 %v1367_v14, %s1274_s17 }
 0x875   : > { %1225 = vrot.lane.b32.xlu0 %v1347_v47, %s1275_s18 }
 0x877   : > { %936 = vrot.lane.b32.xlu1 %v1124_v1, %s1273_s16 }
 0x879   : > { %934 = vrot.lane.b32.xlu0 %v713_v49, %s1273_s16 }
 0x8eb   : > { %v832_v4 = vpop.xlane.xlu1 %831 }
 0x8ec   : > { %1257 = vrcp.f32 %v832_v4  ;;  %v829_v5 = vpop.xlane.xlu0 %828 }
 0x8ed   : > { %1259 = vrcp.f32 %v829_v5 }
 0x8ef   : > { %v927_v16 = vpop.permute.xlu1 %926 }
 0x8f0   : > { %v1226_v7 = vpop.permute.xlu0 %1225  ;;  %v948_v21 = vsel %vm127_vm0, %v1343_v40, %v927_v16 }
 0x8f1   : > { %v1228_v8 = vunpack.i.h.bf16 %v1226_v7  ;;  %v1227_v9 = vunpack.i.l.bf16 %v1226_v7 }
 0x8f3   : > { %v1175_v10 = vpack.c.bf16 %v1228_v8, %v1227_v9  ;;  %v929_v17 = vpop.permute.xlu1 %928 }
 0x8f4   : > { %v935_v19 = vpop.permute.xlu0 %934  ;;  %v949_v20 = vsel %vm127_vm0, %v1341_v39, %v929_v17 }
 0x8f5   : > { %1176 = vmatprep.subr.bf16.mxu0 %v1175_v10  ;;  %v951_v24 = vsel %vm950_vm2, %v948_v21, %v935_v19 }
 0x8f6   : > { %v1258_v11 = vpop.eup %1257  ;;  %1178 = vmatpush3.bf16.msra.mxu0 %v1175_v10 }
 0x8f7   : > { %v1260_v12 = vpop.eup %1259  ;;  %v836_v14 = vmul.f32 %v1258_v11, %v1254_v61  ;;  %v937_v18 = vpop.permute.xlu1 %936 }
 0x8f8   : > { %v834_v13 = vmul.f32 %v1260_v12, %v1256_v62  ;;  %v952_v22 = vsel %vm950_vm2, %v949_v20, %v937_v18 }
 0x8fa   : > { %1136 = vmatprep.mubr.msk.f32.mxu0 %vm127_vm0, %v834_v13 }
 0x8fb   : > { %1137 = vmatmul.mubr.msk.f32.vlgmr.msra.gmra.mrb[6].mxu0 %vm127_vm0, %v836_v14 }
 0x9ce   : > { %v1138_v47 = vpop.f32.mrb[6].mxu0 }
 0x9cf   : > { %944 = vrot.lane.b32.xlu1 %v1138_v47, %s1270_s13  ;;  %v915_v15 = vpop.f32.mrb[7].mxu0 }
 0x9d0   : > { %942 = vrot.lane.b32.xlu0 %v915_v15, %s1270_s13 }
 0xa41   : > { %v945_v23 = vpop.permute.xlu1 %944 }
 0xa42   : > { %v955_v25 = vsel %vm953_vm3, %v952_v22, %v945_v23  ;;  %v943_v26 = vpop.permute.xlu0 %942 }
 0xa43   : > { %958 = vst.msk [vmem:[%s116_s22 + $0x8] sm:$0xff] %vm956_vm4, %v955_v25  ;;  %v954_v27 = vsel %vm953_vm3, %v951_v24, %v943_v26 }
 0xa44   : > { %957 = vst.msk [vmem:[%s116_s22] sm:$0xff] %vm956_vm4, %v954_v27 }
 0xa45 PF: > { %s11_s6 = sadd.s32 1, %s1267_s6  }
 0xa46   : > { %p8_p4 = scmp.ge.s32.totalorder %s11_s6, 4  }
 0xa48   :  { %10 = sbr.rel (!%p8_p4) target bundleno = 1 (0x1), region = 54 }

// kernel: transformer_forward.13
= control target key start
LH: loop header
LB: loop body
LE: loop exit
PB: predicated region body
PF: predicated region fallthrough
CT: control target
= control target key end

     0   :  { %vm24_vm0 = vcmask 523264   ;;  %s576_s0 = inlined_call_operand.vmem [shape: f32[32,64], index: 0, kind: input, shape index: {}]   ;;  %s577_s3 = inlined_call_operand.vmem [shape: f32[64,128], index: 3, kind: input, shape index: {}]   ;;  %s578_s1 = inlined_call_operand.vmem [shape: f32[1,64], index: 1, kind: input, shape index: {}]   ;;  %s579_s2 = inlined_call_operand.vmem [shape: f32[1,64], index: 2, kind: input, shape index: {}]   ;;  %s580_s4 = inlined_call_operand.vmem [shape: f32[1,128], index: 4, kind: input, shape index: {}]   ;;  %s581_s5 = inlined_call_operand.vmem [shape: f32[32,128], index: 5, kind: output, shape index: {}]  }
   0x1   :  { %v20_v0 = vld [vmem:[%s576_s0] sm:$0xff]  ;;  %v21_v1 = vld [vmem:[%s576_s0 + $0x8] sm:$0xff]  ;;  %v22_v2 = vld [vmem:[%s576_s0 + $0x10] sm:$0xff] }
   0x2   :  { %v25_v3 = vsel %vm24_vm0, %v20_v0, 0.0  ;;  %v28_v4 = vsel %vm24_vm0, %v21_v1, 0.0  ;;  %v23_v5 = vld [vmem:[%s576_s0 + $0x18] sm:$0xff]  ;;  %v31_v6 = vsel %vm24_vm0, %v22_v2, 0.0  ;;  %v100_v28 = vld [vmem:[%s577_s3] sm:$0xff]  ;;  %v101_v29 = vld [vmem:[%s577_s3 + $0x8] sm:$0xff] }
   0x3   :  { %26 = vadd.xlane.f32.xlu0 %v25_v3  ;;  %29 = vadd.xlane.f32.xlu1 %v28_v4  ;;  %v34_v7 = vsel %vm24_vm0, %v23_v5, 0.0  ;;  %v377_v30 = vpack.c.bf16 %v101_v29, %v100_v28  ;;  %v102_v31 = vld [vmem:[%s577_s3 + $0x10] sm:$0xff]  ;;  %v103_v32 = vld [vmem:[%s577_s3 + $0x18] sm:$0xff]  ;;  %v104_v34 = vld [vmem:[%s577_s3 + $0x20] sm:$0xff] }
   0x4   :  { %v381_v33 = vpack.c.bf16 %v103_v32, %v102_v31  ;;  %v105_v35 = vld [vmem:[%s577_s3 + $0x28] sm:$0xff]  ;;  %v106_v37 = vld [vmem:[%s577_s3 + $0x30] sm:$0xff]  ;;  %v107_v38 = vld [vmem:[%s577_s3 + $0x38] sm:$0xff] }
   0x5   :  { %378 = vmatprep.subr.bf16.mxu0 %v377_v30  ;;  %393 = vmatprep.subr.bf16.mxu1 %v377_v30  ;;  %v385_v36 = vpack.c.bf16 %v105_v35, %v104_v34  ;;  %v389_v39 = vpack.c.bf16 %v107_v38, %v106_v37  ;;  %v328_v53 = vld [vmem:[%s578_s1] ss:$0 sm:$0xff] }
   0x6   :  { %380 = vmatpush3.bf16.msra.mxu0 %v377_v30  ;;  %397 = vmatpush3.bf16.msra.mxu1 %v377_v30  ;;  %v329_v55 = vld [vmem:[%s579_s2] ss:$0 sm:$0xff] }
   0x7   :  { %32 = vadd.xlane.f32.xlu0 %v31_v6  ;;  %35 = vadd.xlane.f32.xlu1 %v34_v7  ;;  %v330_v6 = vld [vmem:[%s580_s4] ss:$0 sm:$0xff] }
   0x8   :  { %382 = vmatprep.subr.bf16.mxu0 %v381_v33  ;;  %394 = vmatprep.subr.bf16.mxu1 %v381_v33 }
   0xa   :  { %384 = vmatpush3.bf16.msra.mxu0 %v381_v33  ;;  %398 = vmatpush3.bf16.msra.mxu1 %v381_v33 }
   0xb   :  { %386 = vmatprep.subr.bf16.mxu0 %v385_v36  ;;  %395 = vmatprep.subr.bf16.mxu1 %v385_v36 }
   0xe   :  { %388 = vmatpush3.bf16.msra.mxu0 %v385_v36  ;;  %399 = vmatpush3.bf16.msra.mxu1 %v385_v36 }
   0xf   :  { %390 = vmatprep.subr.bf16.mxu0 %v389_v39  ;;  %396 = vmatprep.subr.bf16.mxu1 %v389_v39 }
  0x12   :  { %392 = vmatpush3.bf16.msra.mxu0 %v389_v39  ;;  %400 = vmatpush3.bf16.msra.mxu1 %v389_v39 }
  0x90   :  { %v27_v8 = vpop.xlane.xlu0 %26  ;;  %v30_v9 = vpop.xlane.xlu1 %29 }
  0x91   :  { %v38_v10 = vmul.f32 0.015625, %v27_v8  ;;  %v39_v11 = vmul.f32 0.015625, %v30_v9 }
  0x93   :  { %v471_v12 = vsub.f32 %v20_v0, %v38_v10  ;;  %v473_v13 = vsub.f32 %v21_v1, %v39_v11 }
  0x94   :  { %v33_v14 = vpop.xlane.xlu0 %32  ;;  %v36_v15 = vpop.xlane.xlu1 %35 }
  0x95   :  { %v40_v16 = vmul.f32 0.015625, %v33_v14  ;;  %v41_v17 = vmul.f32 0.015625, %v36_v15  ;;  %v46_v18 = vmul.f32 %v471_v12, %v471_v12  ;;  %v47_v19 = vmul.f32 %v473_v13, %v473_v13 }
  0x97   :  { %v479_v20 = vsub.f32 %v22_v2, %v40_v16  ;;  %v481_v21 = vsub.f32 %v23_v5, %v41_v17  ;;  %v50_v22 = vsel %vm24_vm0, %v46_v18, 0.0  ;;  %v53_v23 = vsel %vm24_vm0, %v47_v19, 0.0 }
  0x98   :  { %51 = vadd.xlane.f32.xlu0 %v50_v22 }
  0x99   :  { %v48_v24 = vmul.f32 %v479_v20, %v479_v20  ;;  %v49_v25 = vmul.f32 %v481_v21, %v481_v21 }
  0x9b   :  { %v56_v26 = vsel %vm24_vm0, %v48_v24, 0.0  ;;  %v59_v27 = vsel %vm24_vm0, %v49_v25, 0.0 }
  0x9c   :  { %54 = vadd.xlane.f32.xlu0 %v53_v23  ;;  %57 = vadd.xlane.f32.xlu1 %v56_v26 }
  0xa0   :  { %60 = vadd.xlane.f32.xlu1 %v59_v27 }
 0x125   :  { %v52_v40 = vpop.xlane.xlu0 %51 }
 0x126   :  { %v62_v41 = vmul.f32 0.015625, %v52_v40 }
 0x128   :  { %v66_v42 = vadd.f32 1e-05, %v62_v41 }
 0x129   :  { %v58_v43 = vpop.xlane.xlu1 %57  ;;  %v55_v44 = vpop.xlane.xlu0 %54 }
 0x12a   :  { %401 = vrsqrt.f32 %v66_v42  ;;  %v64_v45 = vmul.f32 0.015625, %v58_v43  ;;  %v63_v46 = vmul.f32 0.015625, %v55_v44 }
 0x12c   :  { %v68_v47 = vadd.f32 1e-05, %v64_v45  ;;  %v67_v48 = vadd.f32 1e-05, %v63_v46 }
 0x12d   :  { %v61_v49 = vpop.xlane.xlu1 %60 }
 0x12e   :  { %403 = vrsqrt.f32 %v68_v47  ;;  %v65_v50 = vmul.f32 0.015625, %v61_v49 }
 0x12f   :  { %405 = vrsqrt.f32 %v67_v48 }
 0x130   :  { %v69_v51 = vadd.f32 1e-05, %v65_v50 }
 0x132   :  { %407 = vrsqrt.f32 %v69_v51 }
 0x134   :  { %v402_v52 = vpop.eup %401 }
 0x135   :  { %v74_v54 = vmul.f32 %v402_v52, %v471_v12 }
 0x137   :  { %v85_v56 = vmul.f32 %v328_v53, %v74_v54 }
 0x138   :  { %v404_v57 = vpop.eup %403 }
 0x139   :  { %v406_v58 = vpop.eup %405  ;;  %v96_v59 = vadd.f32 %v329_v55, %v85_v56  ;;  %v76_v60 = vmul.f32 %v404_v57, %v479_v20 }
 0x13a   :  { %v75_v61 = vmul.f32 %v406_v58, %v473_v13 }
 0x13b   :  { %371 = vmatprep.mubr.msk.f32.mxu0 %vm24_vm0, %v96_v59  ;;  %v87_v62 = vmul.f32 %v328_v53, %v76_v60 }
 0x13c   :  { %v408_v63 = vpop.eup %407  ;;  %v86_v0 = vmul.f32 %v328_v53, %v75_v61 }
 0x13d   :  { %v98_v1 = vadd.f32 %v329_v55, %v87_v62  ;;  %v77_v2 = vmul.f32 %v408_v63, %v481_v21 }
 0x13e   :  { %v97_v3 = vadd.f32 %v329_v55, %v86_v0 }
 0x13f   :  { %374 = vmatprep.mubr.msk.f32.mxu1 %vm24_vm0, %v98_v1  ;;  %v88_v4 = vmul.f32 %v328_v53, %v77_v2 }
 0x140   :  { %372 = vmatmul.mubr.msk.f32.vlgmr.msra.gmra.mrb[0].mxu0 %vm24_vm0, %v97_v3 }
 0x141   :  { %v99_v5 = vadd.f32 %v329_v55, %v88_v4 }
 0x143   :  { %375 = vmatmul.mubr.msk.f32.vlgmr.msra.gmra.mrb[0].mxu1 %vm24_vm0, %v99_v5 }
 0x213   :  { %v373_v7 = vpop.f32.mrb[0].mxu0 }
 0x214   :  { %v532_v8 = vadd.f32 %v373_v7, %v330_v6  ;;  %v193_v9 = vpop.f32.mrb[1].mxu0 }
 0x215   :  { %v534_v10 = vadd.f32 %v330_v6, %v193_v9 }
 0x216   :  { %v537_v11 = vmul.f32 0.70710677, %v532_v8  ;;  %v376_v12 = vpop.f32.mrb[0].mxu1 }
 0x217   :  { %v540_v13 = vmul.f32 0.70710677, %v534_v10  ;;  %v542_v14 = vadd.f32 %v376_v12, %v330_v6  ;;  %v203_v15 = vpop.f32.mrb[1].mxu1 }
 0x218   :  { %v221_v16 = vand.u32 2147483647, %v537_v11  ;;  %v545_v17 = vadd.f32 %v330_v6, %v203_v15  ;;  %vm301_vm1 = vcmp.lt.f32.partialorder %v537_v11, 0.0 }
 0x219   :  { %v220_v18 = vand.u32 2147483647, %v540_v13  ;;  %v549_v19 = vmul.f32 0.70710677, %v542_v14  ;;  %vm300_vm2 = vcmp.lt.f32.partialorder %v540_v13, 0.0  ;;  %v215_v13 = vmul.f32 0.5, %v542_v14 }
 0x21a   :  { %v225_v20 = vmul.f32 0.3275911, %v221_v16  ;;  %v552_v21 = vmul.f32 0.70710677, %v545_v17  ;;  %v277_v31 = vsub.f32 0.0, %v221_v16 }
 0x21b   :  { %v224_v22 = vmul.f32 0.3275911, %v220_v18  ;;  %v223_v23 = vand.u32 2147483647, %v549_v19  ;;  %v276_v32 = vsub.f32 0.0, %v220_v18  ;;  %vm303_vm3 = vcmp.lt.f32.partialorder %v549_v19, 0.0 }
 0x21c   :  { %v229_v24 = vadd.f32 1.0, %v225_v20  ;;  %v222_v25 = vand.u32 2147483647, %v552_v21  ;;  %v281_v34 = vmul.f32 %v277_v31, %v221_v16  ;;  %vm302_vm4 = vcmp.lt.f32.partialorder %v552_v21, 0.0 }
 0x21d   :  { %v228_v26 = vadd.f32 1.0, %v224_v22  ;;  %v227_v27 = vmul.f32 0.3275911, %v223_v23  ;;  %v279_v35 = vsub.f32 0.0, %v223_v23  ;;  %v280_v38 = vmul.f32 %v276_v32, %v220_v18 }
 0x21e   :  { %409 = vrcp.f32 %v229_v24  ;;  %v226_v28 = vmul.f32 0.3275911, %v222_v25  ;;  %v278_v40 = vsub.f32 0.0, %v222_v25  ;;  %v286_v43 = vmul.f32 1.442695, %v281_v34 }
 0x21f   :  { %411 = vrcp.f32 %v228_v26  ;;  %v231_v29 = vadd.f32 1.0, %v227_v27  ;;  %v283_v45 = vmul.f32 %v279_v35, %v223_v23  ;;  %v284_v47 = vmul.f32 1.442695, %v280_v38 }
 0x220   :  { %v230_v30 = vadd.f32 1.0, %v226_v28  ;;  %v282_v51 = vmul.f32 %v278_v40, %v222_v25  ;;  %v214_v19 = vmul.f32 0.5, %v545_v17 }
 0x221   :  { %413 = vrcp.f32 %v231_v29  ;;  %v290_v56 = vmul.f32 1.442695, %v283_v45 }
 0x222   :  { %415 = vrcp.f32 %v230_v30  ;;  %v288_v61 = vmul.f32 1.442695, %v282_v51 }
 0x223   :  { %417 = vpow2.f32 %v286_v43 }
 0x224   :  { %419 = vpow2.f32 %v284_v47 }
 0x225   :  { %421 = vpow2.f32 %v290_v56 }
 0x226   :  { %423 = vpow2.f32 %v288_v61 }
 0x228   :  { %v410_v33 = vpop.eup %409 }
 0x229   :  { %v412_v36 = vpop.eup %411  ;;  %v241_v37 = vmul.f32 1.0614054, %v410_v33 }
 0x22a   :  { %v240_v39 = vmul.f32 1.0614054, %v412_v36 }
 0x22b   :  { %v336_v41 = vadd.f32 -1.4531521, %v241_v37  ;;  %v414_v42 = vpop.eup %413 }
 0x22c   :  { %v335_v44 = vadd.f32 -1.4531521, %v240_v39  ;;  %v243_v48 = vmul.f32 1.0614054, %v414_v42  ;;  %v416_v49 = vpop.eup %415 }
 0x22d   :  { %v249_v46 = vmul.f32 %v410_v33, %v336_v41  ;;  %v242_v54 = vmul.f32 1.0614054, %v416_v49  ;;  %v418_v20 = vpop.eup %417  ;;  %v213_v41 = vmul.f32 0.5, %v532_v8 }
 0x22e   :  { %v248_v50 = vmul.f32 %v412_v36, %v335_v44  ;;  %v338_v53 = vadd.f32 -1.4531521, %v243_v48  ;;  %v420_v23 = vpop.eup %419 }
 0x22f   :  { %v253_v52 = vadd.f32 1.4214138, %v249_v46  ;;  %v337_v59 = vadd.f32 -1.4531521, %v242_v54  ;;  %v422_v31 = vpop.eup %421 }
 0x230   :  { %v252_v55 = vadd.f32 1.4214138, %v248_v50  ;;  %v251_v58 = vmul.f32 %v414_v42, %v338_v53  ;;  %v424_v38 = vpop.eup %423 }
 0x231   :  { %v257_v57 = vmul.f32 %v410_v33, %v253_v52  ;;  %v250_v0 = vmul.f32 %v416_v49, %v337_v59 }
 0x232   :  { %v256_v60 = vmul.f32 %v412_v36, %v252_v55  ;;  %v255_v63 = vadd.f32 1.4214138, %v251_v58 }
 0x233   :  { %v340_v62 = vadd.f32 -0.28449672, %v257_v57  ;;  %v254_v4 = vadd.f32 1.4214138, %v250_v0 }
 0x234   :  { %v339_v1 = vadd.f32 -0.28449672, %v256_v60  ;;  %v259_v3 = vmul.f32 %v414_v42, %v255_v63 }
 0x235   :  { %v265_v2 = vmul.f32 %v410_v33, %v340_v62  ;;  %v258_v9 = vmul.f32 %v416_v49, %v254_v4 }
 0x236   :  { %v264_v5 = vmul.f32 %v412_v36, %v339_v1  ;;  %v342_v7 = vadd.f32 -0.28449672, %v259_v3 }
 0x237   :  { %v269_v6 = vadd.f32 0.2548296, %v265_v2  ;;  %v341_v18 = vadd.f32 -0.28449672, %v258_v9 }
 0x238   :  { %v268_v12 = vadd.f32 0.2548296, %v264_v5  ;;  %v267_v16 = vmul.f32 %v414_v42, %v342_v7 }
 0x239   :  { %v273_v15 = vmul.f32 %v410_v33, %v269_v6  ;;  %v266_v26 = vmul.f32 %v416_v49, %v341_v18 }
 0x23a   :  { %v272_v22 = vmul.f32 %v412_v36, %v268_v12  ;;  %v271_v25 = vadd.f32 0.2548296, %v267_v16 }
 0x23b   :  { %v293_v24 = vmul.f32 %v418_v20, %v273_v15  ;;  %v270_v30 = vadd.f32 0.2548296, %v266_v26 }
 0x23c   :  { %v292_v27 = vmul.f32 %v420_v23, %v272_v22  ;;  %v275_v29 = vmul.f32 %v414_v42, %v271_v25  ;;  %v212_v42 = vmul.f32 0.5, %v534_v10 }
 0x23d   :  { %v297_v28 = vsub.f32 1.0, %v293_v24  ;;  %v274_v37 = vmul.f32 %v416_v49, %v270_v30 }
 0x23e   :  { %v296_v32 = vsub.f32 1.0, %v292_v27  ;;  %v295_v35 = vmul.f32 %v422_v31, %v275_v29 }
 0x23f   :  { %v305_v34 = vsub.f32 0.0, %v297_v28  ;;  %v294_v40 = vmul.f32 %v424_v38, %v274_v37 }
 0x240   :  { %v304_v33 = vsub.f32 0.0, %v296_v32  ;;  %v299_v36 = vsub.f32 1.0, %v295_v35 }
 0x241   :  { %v309_v39 = vsel %vm301_vm1, %v305_v34, %v297_v28  ;;  %v298_v47 = vsub.f32 1.0, %v294_v40 }
 0x242   :  { %v313_v43 = vadd.f32 1.0, %v309_v39  ;;  %v308_v44 = vsel %vm300_vm2, %v304_v33, %v296_v32  ;;  %v307_v46 = vsub.f32 0.0, %v299_v36 }
 0x243   :  { %v312_v45 = vadd.f32 1.0, %v308_v44  ;;  %v306_v50 = vsub.f32 0.0, %v298_v47 }
 0x244   :  { %v317_v48 = vmul.f32 %v313_v43, %v213_v41  ;;  %v311_v11 = vsel %vm303_vm3, %v307_v46, %v299_v36 }
 0x245   :  { %v316_v49 = vmul.f32 %v312_v45, %v212_v42  ;;  %v315_v8 = vadd.f32 1.0, %v311_v11  ;;  %v310_v10 = vsel %vm302_vm4, %v306_v50, %v298_v47 }
 0x246   :  { %321 = vst [vmem:[%s581_s5 + $0x8] sm:$0xff] %v317_v48  ;;  %v314_v52 = vadd.f32 1.0, %v310_v10 }
 0x247   :  { %320 = vst [vmem:[%s581_s5] sm:$0xff] %v316_v49  ;;  %v319_v51 = vmul.f32 %v315_v8, %v215_v13 }
 0x248   :  { %v318_v53 = vmul.f32 %v314_v52, %v214_v19 }
 0x249   :  { %323 = vst [vmem:[%s581_s5 + $0x18] sm:$0xff] %v319_v51 }
 0x24a   :  { %322 = vst [vmem:[%s581_s5 + $0x10] sm:$0xff] %v318_v53 }

// kernel: transformer_forward.14
= control target key start
LH: loop header
LB: loop body
LE: loop exit
PB: predicated region body
PF: predicated region fallthrough
CT: control target
= control target key end

     0   :  { %vm137_vm0 = vcmask 523264   ;;  %s365_s1 = inlined_call_operand.vmem [shape: f32[128,64], index: 1, kind: input, shape index: {}]   ;;  %s366_s0 = inlined_call_operand.vmem [shape: f32[32,128], index: 0, kind: input, shape index: {}]   ;;  %s367_s2 = inlined_call_operand.vmem [shape: f32[1,64], index: 2, kind: input, shape index: {}]   ;;  %s368_s3 = inlined_call_operand.vmem [shape: f32[32,64], index: 3, kind: input, shape index: {}]   ;;  %s369_s4 = inlined_call_operand.vmem [shape: f32[32,64], index: 4, kind: output, shape index: {}]  }
   0x1   :  { %v21_v0 = vld [vmem:[%s365_s1] sm:$0xff]  ;;  %v22_v1 = vld [vmem:[%s365_s1 + $0x8] sm:$0xff]  ;;  %v23_v2 = vld [vmem:[%s365_s1 + $0x10] sm:$0xff] }
   0x2   :  { %v205_v3 = vpack.c.bf16 %v22_v1, %v21_v0  ;;  %v24_v4 = vld [vmem:[%s365_s1 + $0x18] sm:$0xff]  ;;  %v25_v6 = vld [vmem:[%s365_s1 + $0x20] sm:$0xff]  ;;  %v26_v7 = vld [vmem:[%s365_s1 + $0x28] sm:$0xff] }
   0x3   :  { %v209_v5 = vpack.c.bf16 %v24_v4, %v23_v2  ;;  %v213_v8 = vpack.c.bf16 %v26_v7, %v25_v6  ;;  %v17_v9 = vld [vmem:[%s366_s0] sm:$0xff]  ;;  %v19_v10 = vld [vmem:[%s366_s0 + $0x10] sm:$0xff]  ;;  %v28_v12 = vld [vmem:[%s365_s1 + $0x38] sm:$0xff] }
   0x4   :  { %206 = vmatprep.subr.bf16.mxu0 %v205_v3  ;;  %237 = vmatprep.subr.bf16.mxu1 %v205_v3  ;;  %v27_v11 = vld [vmem:[%s365_s1 + $0x30] sm:$0xff]  ;;  %v29_v14 = vld [vmem:[%s365_s1 + $0x40] sm:$0xff]  ;;  %v30_v15 = vld [vmem:[%s365_s1 + $0x48] sm:$0xff] }
   0x5   :  { %208 = vmatpush3.bf16.msra.mxu0 %v205_v3  ;;  %245 = vmatpush3.bf16.msra.mxu1 %v205_v3  ;;  %v217_v13 = vpack.c.bf16 %v28_v12, %v27_v11  ;;  %v221_v16 = vpack.c.bf16 %v30_v15, %v29_v14  ;;  %v31_v17 = vld [vmem:[%s365_s1 + $0x50] sm:$0xff]  ;;  %v32_v18 = vld [vmem:[%s365_s1 + $0x58] sm:$0xff]  ;;  %v33_v20 = vld [vmem:[%s365_s1 + $0x60] sm:$0xff] }
   0x6   :  { %210 = vmatprep.subr.bf16.mxu0 %v209_v5  ;;  %238 = vmatprep.subr.bf16.mxu1 %v209_v5  ;;  %v225_v19 = vpack.c.bf16 %v32_v18, %v31_v17  ;;  %v34_v21 = vld [vmem:[%s365_s1 + $0x68] sm:$0xff]  ;;  %v35_v23 = vld [vmem:[%s365_s1 + $0x70] sm:$0xff]  ;;  %v36_v24 = vld [vmem:[%s365_s1 + $0x78] sm:$0xff] }
   0x7   :  { %199 = vmatprep.mubr.f32.mxu0 %v17_v9  ;;  %202 = vmatprep.mubr.f32.mxu1 %v19_v10  ;;  %v229_v22 = vpack.c.bf16 %v34_v21, %v33_v20  ;;  %v233_v25 = vpack.c.bf16 %v36_v24, %v35_v23  ;;  %v18_v26 = vld [vmem:[%s366_s0 + $0x8] sm:$0xff]  ;;  %v20_v27 = vld [vmem:[%s366_s0 + $0x18] sm:$0xff]  ;;  %v146_v28 = vld [vmem:[%s367_s2] ss:$0 sm:$0xff] }
   0x8   :  { %v130_v30 = vld [vmem:[%s368_s3 + $0x8] sm:$0xff]  ;;  %v132_v32 = vld [vmem:[%s368_s3 + $0x18] sm:$0xff]  ;;  %v129_v36 = vld [vmem:[%s368_s3] sm:$0xff] }
   0x9   :  { %212 = vmatpush3.bf16.msra.mxu0 %v209_v5  ;;  %246 = vmatpush3.bf16.msra.mxu1 %v209_v5  ;;  %v131_v38 = vld [vmem:[%s368_s3 + $0x10] sm:$0xff] }
   0xa   :  { %214 = vmatprep.subr.bf16.mxu0 %v213_v8  ;;  %239 = vmatprep.subr.bf16.mxu1 %v213_v8 }
   0xd   :  { %216 = vmatpush3.bf16.msra.mxu0 %v213_v8  ;;  %247 = vmatpush3.bf16.msra.mxu1 %v213_v8 }
   0xe   :  { %218 = vmatprep.subr.bf16.mxu0 %v217_v13  ;;  %240 = vmatprep.subr.bf16.mxu1 %v217_v13 }
  0x11   :  { %220 = vmatpush3.bf16.msra.mxu0 %v217_v13  ;;  %248 = vmatpush3.bf16.msra.mxu1 %v217_v13 }
  0x12   :  { %222 = vmatprep.subr.bf16.mxu0 %v221_v16  ;;  %241 = vmatprep.subr.bf16.mxu1 %v221_v16 }
  0x15   :  { %224 = vmatpush3.bf16.msra.mxu0 %v221_v16  ;;  %249 = vmatpush3.bf16.msra.mxu1 %v221_v16 }
  0x16   :  { %226 = vmatprep.subr.bf16.mxu0 %v225_v19  ;;  %242 = vmatprep.subr.bf16.mxu1 %v225_v19 }
  0x19   :  { %228 = vmatpush3.bf16.msra.mxu0 %v225_v19  ;;  %250 = vmatpush3.bf16.msra.mxu1 %v225_v19 }
  0x1a   :  { %230 = vmatprep.subr.bf16.mxu0 %v229_v22  ;;  %243 = vmatprep.subr.bf16.mxu1 %v229_v22 }
  0x1d   :  { %232 = vmatpush3.bf16.msra.mxu0 %v229_v22  ;;  %251 = vmatpush3.bf16.msra.mxu1 %v229_v22 }
  0x1e   :  { %234 = vmatprep.subr.bf16.mxu0 %v233_v25  ;;  %244 = vmatprep.subr.bf16.mxu1 %v233_v25 }
  0x21   :  { %236 = vmatpush3.bf16.msra.mxu0 %v233_v25  ;;  %252 = vmatpush3.bf16.msra.mxu1 %v233_v25 }
  0x24   :  { %200 = vmatmul.mubr.f32.vlgmr.msra.gmra.mrb[0].mxu0 %v18_v26  ;;  %203 = vmatmul.mubr.f32.vlgmr.msra.gmra.mrb[0].mxu1 %v20_v27 }
  0xf7   :  { %v201_v29 = vpop.f32.mrb[0].mxu0  ;;  %v204_v31 = vpop.f32.mrb[0].mxu1 }
  0xf8   :  { %v116_v33 = vadd.f32 %v201_v29, %v146_v28  ;;  %v126_v34 = vadd.f32 %v204_v31, %v146_v28  ;;  %v110_v35 = vpop.f32.mrb[1].mxu0  ;;  %v120_v37 = vpop.f32.mrb[1].mxu1 }
  0xf9   :  { %v111_v39 = vadd.f32 %v146_v28, %v110_v35  ;;  %v121_v40 = vadd.f32 %v146_v28, %v120_v37 }
  0xfa   :  { %v134_v41 = vadd.f32 %v130_v30, %v116_v33  ;;  %v136_v42 = vadd.f32 %v132_v32, %v126_v34 }
  0xfb   :  { %v133_v43 = vadd.f32 %v129_v36, %v111_v39  ;;  %v135_v44 = vadd.f32 %v131_v38, %v121_v40 }
  0xfc   :  { %139 = vst.msk [vmem:[%s369_s4 + $0x8] sm:$0xff] %vm137_vm0, %v134_v41  ;;  %141 = vst.msk [vmem:[%s369_s4 + $0x18] sm:$0xff] %vm137_vm0, %v136_v42 }
  0xfd   :  { %138 = vst.msk [vmem:[%s369_s4] sm:$0xff] %vm137_vm0, %v133_v43  ;;  %140 = vst.msk [vmem:[%s369_s4 + $0x10] sm:$0xff] %vm137_vm0, %v135_v44 }

// kernel: transformer_forward.19
= control target key start
LH: loop header
LB: loop body
LE: loop exit
PB: predicated region body
PF: predicated region fallthrough
CT: control target
= control target key end

     0   :  { %s408_s0 = inlined_call_operand.vmem [shape: f32[32,128], index: 0, kind: input, shape index: {}]   ;;  %s409_s1 = inlined_call_operand.vmem [shape: f32[128,64], index: 1, kind: input, shape index: {}]   ;;  %s410_s2 = inlined_call_operand.vmem [shape: f32[1,64], index: 2, kind: input, shape index: {}]   ;;  %s411_s3 = inlined_call_operand.vmem [shape: f32[32,64], index: 3, kind: input, shape index: {}]   ;;  %s412_s4 = inlined_call_operand.hbm [shape: f32[32,64], index: 4, kind: output, shape index: {}]  }
   0x1   :  { %v22_v0 = vld [vmem:[%s409_s1] sm:$0xff]  ;;  %v23_v1 = vld [vmem:[%s409_s1 + $0x8] sm:$0xff]  ;;  %v24_v2 = vld [vmem:[%s409_s1 + $0x10] sm:$0xff] }
   0x2   :  { %v218_v3 = vpack.c.bf16 %v23_v1, %v22_v0  ;;  %v25_v4 = vld [vmem:[%s409_s1 + $0x18] sm:$0xff]  ;;  %v26_v6 = vld [vmem:[%s409_s1 + $0x20] sm:$0xff]  ;;  %v27_v7 = vld [vmem:[%s409_s1 + $0x28] sm:$0xff] }
   0x3   :  { %v222_v5 = vpack.c.bf16 %v25_v4, %v24_v2  ;;  %v226_v8 = vpack.c.bf16 %v27_v7, %v26_v6  ;;  %v18_v9 = vld [vmem:[%s408_s0] sm:$0xff]  ;;  %v20_v10 = vld [vmem:[%s408_s0 + $0x10] sm:$0xff]  ;;  %v29_v12 = vld [vmem:[%s409_s1 + $0x38] sm:$0xff] }
   0x4   :  { %219 = vmatprep.subr.bf16.mxu0 %v218_v3  ;;  %250 = vmatprep.subr.bf16.mxu1 %v218_v3  ;;  %v28_v11 = vld [vmem:[%s409_s1 + $0x30] sm:$0xff] }
   0x5   :  { %221 = vmatpush3.bf16.msra.mxu0 %v218_v3  ;;  %258 = vmatpush3.bf16.msra.mxu1 %v218_v3 }
   0x6   :  { %223 = vmatprep.subr.bf16.mxu0 %v222_v5  ;;  %251 = vmatprep.subr.bf16.mxu1 %v222_v5 }
   0x7   :  { %212 = vmatprep.mubr.f32.mxu0 %v18_v9  ;;  %215 = vmatprep.mubr.f32.mxu1 %v20_v10 }
   0x8   :  { %9 = vsyncpa [#allocation3], 0  ;;  %v230_v13 = vpack.c.bf16 %v29_v12, %v28_v11  ;;  %v30_v14 = vld [vmem:[%s409_s1 + $0x40] sm:$0xff]  ;;  %v31_v15 = vld [vmem:[%s409_s1 + $0x48] sm:$0xff]  ;;  %s293_s8 = smov [#allocation2]   ;;  %vm138_vm0 = vcmask 523264  }
   0x9   :  { %225 = vmatpush3.bf16.msra.mxu0 %v222_v5  ;;  %259 = vmatpush3.bf16.msra.mxu1 %v222_v5  ;;  %v234_v16 = vpack.c.bf16 %v31_v15, %v30_v14  ;;  %v32_v17 = vld [vmem:[%s409_s1 + $0x50] sm:$0xff]  ;;  %v33_v18 = vld [vmem:[%s409_s1 + $0x58] sm:$0xff]  ;;  %v34_v20 = vld [vmem:[%s409_s1 + $0x60] sm:$0xff]  ;;  %s148_s9 = sshll.u32 %s293_s8, 4  ;;  %s149_s9 = int_to_ptr.vmem [resolvable:$true] %s148_s9 }
   0xa   :  { %227 = vmatprep.subr.bf16.mxu0 %v226_v8  ;;  %252 = vmatprep.subr.bf16.mxu1 %v226_v8  ;;  %v238_v19 = vpack.c.bf16 %v33_v18, %v32_v17  ;;  %v35_v21 = vld [vmem:[%s409_s1 + $0x68] sm:$0xff]  ;;  %v36_v23 = vld [vmem:[%s409_s1 + $0x70] sm:$0xff]  ;;  %v37_v24 = vld [vmem:[%s409_s1 + $0x78] sm:$0xff]  ;;  %s269_s12 = scalar_lea.vmem %s149_s9, 512  ;;  %p274_p1 = scmp.lt.s32.totalorder %s149_s9, %s149_s9 }
   0xb   :  { %v242_v22 = vpack.c.bf16 %v35_v21, %v34_v20  ;;  %v246_v25 = vpack.c.bf16 %v37_v24, %v36_v23  ;;  %v19_v26 = vld [vmem:[%s408_s0 + $0x8] sm:$0xff]  ;;  %v21_v27 = vld [vmem:[%s408_s0 + $0x18] sm:$0xff]  ;;  %v159_v28 = vld [vmem:[%s410_s2] ss:$0 sm:$0xff]  ;;  %p270_p0 = scmp.ne.s32.totalorder %s149_s9, %s269_s12  ;;  %p275_p2 = scmp.lt.s32.totalorder %s269_s12, %s269_s12 }
   0xc   :  { %v131_v30 = vld [vmem:[%s411_s3 + $0x8] sm:$0xff]  ;;  %v133_v32 = vld [vmem:[%s411_s3 + $0x18] sm:$0xff]  ;;  %v130_v36 = vld [vmem:[%s411_s3] sm:$0xff] }
   0xd   :  { %229 = vmatpush3.bf16.msra.mxu0 %v226_v8  ;;  %260 = vmatpush3.bf16.msra.mxu1 %v226_v8  ;;  %v132_v38 = vld [vmem:[%s411_s3 + $0x10] sm:$0xff]  ;;  %p276_p3 = por %p275_p2, %p274_p1 }
   0xe   :  { %231 = vmatprep.subr.bf16.mxu0 %v230_v13  ;;  %253 = vmatprep.subr.bf16.mxu1 %v230_v13 }
   0xf   :  { %p277_p4 = pnand %p276_p3, %p270_p0 }
  0x11   :  { %233 = vmatpush3.bf16.msra.mxu0 %v230_v13  ;;  %261 = vmatpush3.bf16.msra.mxu1 %v230_v13 }
  0x12   :  { %235 = vmatprep.subr.bf16.mxu0 %v234_v16  ;;  %254 = vmatprep.subr.bf16.mxu1 %v234_v16 }
  0x15   :  { %237 = vmatpush3.bf16.msra.mxu0 %v234_v16  ;;  %262 = vmatpush3.bf16.msra.mxu1 %v234_v16 }
  0x16   :  { %239 = vmatprep.subr.bf16.mxu0 %v238_v19  ;;  %255 = vmatprep.subr.bf16.mxu1 %v238_v19 }
  0x19   :  { %241 = vmatpush3.bf16.msra.mxu0 %v238_v19  ;;  %263 = vmatpush3.bf16.msra.mxu1 %v238_v19 }
  0x1a   :  { %243 = vmatprep.subr.bf16.mxu0 %v242_v22  ;;  %256 = vmatprep.subr.bf16.mxu1 %v242_v22 }
  0x1d   :  { %245 = vmatpush3.bf16.msra.mxu0 %v242_v22  ;;  %264 = vmatpush3.bf16.msra.mxu1 %v242_v22 }
  0x1e   :  { %247 = vmatprep.subr.bf16.mxu0 %v246_v25  ;;  %257 = vmatprep.subr.bf16.mxu1 %v246_v25 }
  0x21   :  { %249 = vmatpush3.bf16.msra.mxu0 %v246_v25  ;;  %265 = vmatpush3.bf16.msra.mxu1 %v246_v25 }
  0x24   :  { %213 = vmatmul.mubr.f32.vlgmr.msra.gmra.mrb[0].mxu0 %v19_v26  ;;  %216 = vmatmul.mubr.f32.vlgmr.msra.gmra.mrb[0].mxu1 %v21_v27 }
  0xf7   :  { %v214_v29 = vpop.f32.mrb[0].mxu0  ;;  %v217_v31 = vpop.f32.mrb[0].mxu1 }
  0xf8   :  { %v117_v33 = vadd.f32 %v214_v29, %v159_v28  ;;  %v127_v34 = vadd.f32 %v217_v31, %v159_v28  ;;  %v111_v35 = vpop.f32.mrb[1].mxu0  ;;  %v121_v37 = vpop.f32.mrb[1].mxu1 }
  0xf9   :  { %v112_v39 = vadd.f32 %v159_v28, %v111_v35  ;;  %v122_v40 = vadd.f32 %v159_v28, %v121_v37 }
  0xfa   :  { %v135_v41 = vadd.f32 %v131_v30, %v117_v33  ;;  %v137_v42 = vadd.f32 %v133_v32, %v127_v34 }
  0xfb   :  { %v134_v43 = vadd.f32 %v130_v36, %v112_v39  ;;  %v136_v44 = vadd.f32 %v132_v38, %v122_v40 }
  0xfc   :  { %140 = vst.msk [vmem:[#allocation2 + $0x8] sm:$0xff] %vm138_vm0, %v135_v41  ;;  %142 = vst.msk [vmem:[#allocation2 + $0x18] sm:$0xff] %vm138_vm0, %v137_v42 }
  0xfd   :  { %139 = vst.msk [vmem:[#allocation2] sm:$0xff] %vm138_vm0, %v134_v43  ;;  %141 = vst.msk [vmem:[#allocation2 + $0x10] sm:$0xff] %vm138_vm0, %v136_v44 }
  0xfe   :  { %280 = shalt.err (!%p277_p4)
}
  0xff   :  { %s281_s14 = scalar_lea.hbm %s412_s4, 512 }
 0x100   :  { %p282_p5 = scmp.ne.s32.totalorder %s412_s4, %s281_s14  ;;  %p285_p6 = scmp.lt.u32.totalorder %s281_s14, %s412_s4 }
 0x102   :  { %p287_p7 = pnand %p285_p6, %p282_p5 }
 0x104   :  { %290 = shalt.err (!%p287_p7)
}
 0x105   :  { %s294_s19 = smov 128   ;;  %s295_s20 = smov 8  }
 0x106   :  { %154 = dma.vmem_to_hbm [thread:$0]  %s149_s9, 512, %s412_s4, [#allocation3], %s294_s19, %s294_s19, %s295_s20  }
 0x107   :  { %291 = dma.done.wait [#allocation3], 512  }
 0x108   :  { %292 = vsyncadd [#allocation3], 4294966784 }
 0x109   :  { %158 = vsyncpa [#allocation3], 1 }

// kernel: transformer_forward.15
= control target key start
LH: loop header
LB: loop body
LE: loop exit
PB: predicated region body
PF: predicated region fallthrough
CT: control target
= control target key end

     0   :  { %vm24_vm0 = vcmask 523264   ;;  %v280_v50 = vmov 0.0   ;;  %s440_s0 = inlined_call_operand.vmem [shape: f32[32,64], index: 0, kind: input, shape index: {}]   ;;  %s441_s3 = inlined_call_operand.vmem [shape: f32[64,192], index: 3, kind: input, shape index: {}]   ;;  %s442_s1 = inlined_call_operand.vmem [shape: f32[1,64], index: 1, kind: input, shape index: {}]   ;;  %s443_s2 = inlined_call_operand.vmem [shape: f32[1,64], index: 2, kind: input, shape index: {}]   ;;  %s444_s4 = inlined_call_operand.vmem [shape: f32[1,192], index: 4, kind: input, shape index: {}]   ;;  %s445_s5 = inlined_call_operand.vmem [shape: f32[32,192], index: 5, kind: output, shape index: {}]  }
   0x1   :  { %v20_v0 = vld [vmem:[%s440_s0] sm:$0xff]  ;;  %v21_v1 = vld [vmem:[%s440_s0 + $0x8] sm:$0xff]  ;;  %v22_v2 = vld [vmem:[%s440_s0 + $0x10] sm:$0xff]  ;;  %204 = vmatprep.mubr.f32.mxu0 %v280_v50  ;;  %216 = vmatprep.mubr.f32.mxu1 %v280_v50 }
   0x2   :  { %v25_v3 = vsel %vm24_vm0, %v20_v0, 0.0  ;;  %v28_v4 = vsel %vm24_vm0, %v21_v1, 0.0  ;;  %v23_v5 = vld [vmem:[%s440_s0 + $0x18] sm:$0xff]  ;;  %v31_v6 = vsel %vm24_vm0, %v22_v2, 0.0  ;;  %v101_v28 = vld [vmem:[%s441_s3 + $0x8] sm:$0xff]  ;;  %v100_v31 = vld [vmem:[%s441_s3] sm:$0xff] }
   0x3   :  { %26 = vadd.xlane.f32.xlu0 %v25_v3  ;;  %29 = vadd.xlane.f32.xlu1 %v28_v4  ;;  %v34_v7 = vsel %vm24_vm0, %v23_v5, 0.0  ;;  %v103_v29 = vld [vmem:[%s441_s3 + $0x18] sm:$0xff]  ;;  %v102_v32 = vld [vmem:[%s441_s3 + $0x10] sm:$0xff]  ;;  %v105_v34 = vld [vmem:[%s441_s3 + $0x28] sm:$0xff] }
   0x4   :  { %v247_v30 = vpack.c.bf16 %v103_v29, %v101_v28  ;;  %v249_v33 = vpack.c.bf16 %v102_v32, %v100_v31  ;;  %v107_v35 = vld [vmem:[%s441_s3 + $0x38] sm:$0xff]  ;;  %v104_v37 = vld [vmem:[%s441_s3 + $0x20] sm:$0xff]  ;;  %v106_v38 = vld [vmem:[%s441_s3 + $0x30] sm:$0xff] }
   0x5   :  { %v251_v36 = vpack.c.bf16 %v107_v35, %v105_v34  ;;  %v253_v39 = vpack.c.bf16 %v106_v38, %v104_v37  ;;  %v109_v40 = vld [vmem:[%s441_s3 + $0x48] sm:$0xff]  ;;  %v111_v41 = vld [vmem:[%s441_s3 + $0x58] sm:$0xff]  ;;  %v108_v43 = vld [vmem:[%s441_s3 + $0x40] sm:$0xff] }
   0x6   :  { %248 = vmatprep.subr.bf16.mxu0 %v247_v30  ;;  %263 = vmatprep.subr.bf16.mxu1 %v247_v30  ;;  %v255_v42 = vpack.c.bf16 %v111_v41, %v109_v40  ;;  %v110_v44 = vld [vmem:[%s441_s3 + $0x50] sm:$0xff]  ;;  %v113_v45 = vld [vmem:[%s441_s3 + $0x68] sm:$0xff]  ;;  %v115_v47 = vld [vmem:[%s441_s3 + $0x78] sm:$0xff] }
   0x7   :  { %32 = vadd.xlane.f32.xlu0 %v31_v6  ;;  %35 = vadd.xlane.f32.xlu1 %v34_v7  ;;  %v257_v46 = vpack.c.bf16 %v110_v44, %v108_v43  ;;  %v112_v48 = vld [vmem:[%s441_s3 + $0x60] sm:$0xff]  ;;  %v114_v49 = vld [vmem:[%s441_s3 + $0x70] sm:$0xff]  ;;  %v259_v51 = vpack.c.bf16 %v115_v47, %v113_v45 }
   0x8   :  { %250 = vmatpush1.bf16.msra.mxu0 %v249_v33  ;;  %267 = vmatpush1.bf16.msra.mxu1 %v249_v33  ;;  %v261_v52 = vpack.c.bf16 %v114_v49, %v112_v48  ;;  %v242_v4 = vld [vmem:[%s443_s2] ss:$0 sm:$0xff] }
   0x9   :  { %252 = vmatprep.subr.bf16.mxu0 %v251_v36  ;;  %264 = vmatprep.subr.bf16.mxu1 %v251_v36 }
   0xc   :  { %254 = vmatpush1.bf16.msra.mxu0 %v253_v39  ;;  %268 = vmatpush1.bf16.msra.mxu1 %v253_v39 }
   0xd   :  { %256 = vmatprep.subr.bf16.mxu0 %v255_v42  ;;  %265 = vmatprep.subr.bf16.mxu1 %v255_v42 }
  0x10   :  { %258 = vmatpush1.bf16.msra.mxu0 %v257_v46  ;;  %269 = vmatpush1.bf16.msra.mxu1 %v257_v46 }
  0x11   :  { %260 = vmatprep.subr.bf16.mxu0 %v259_v51  ;;  %266 = vmatprep.subr.bf16.mxu1 %v259_v51 }
  0x14   :  { %262 = vmatpush1.bf16.msra.mxu0 %v261_v52  ;;  %270 = vmatpush1.bf16.msra.mxu1 %v261_v52 }
  0x90   :  { %v27_v8 = vpop.xlane.xlu0 %26  ;;  %v30_v9 = vpop.xlane.xlu1 %29 }
  0x91   :  { %v38_v10 = vmul.f32 0.015625, %v27_v8  ;;  %v39_v11 = vmul.f32 0.015625, %v30_v9 }
  0x93   :  { %v327_v12 = vsub.f32 %v20_v0, %v38_v10  ;;  %v329_v13 = vsub.f32 %v21_v1, %v39_v11 }
  0x94   :  { %v33_v14 = vpop.xlane.xlu0 %32  ;;  %v36_v15 = vpop.xlane.xlu1 %35 }
  0x95   :  { %v40_v16 = vmul.f32 0.015625, %v33_v14  ;;  %v41_v17 = vmul.f32 0.015625, %v36_v15  ;;  %v46_v18 = vmul.f32 %v327_v12, %v327_v12  ;;  %v47_v19 = vmul.f32 %v329_v13, %v329_v13 }
  0x97   :  { %v335_v20 = vsub.f32 %v22_v2, %v40_v16  ;;  %v337_v21 = vsub.f32 %v23_v5, %v41_v17  ;;  %v50_v22 = vsel %vm24_vm0, %v46_v18, 0.0  ;;  %v53_v23 = vsel %vm24_vm0, %v47_v19, 0.0  ;;  %v241_v2 = vld [vmem:[%s442_s1] ss:$0 sm:$0xff] }
  0x98   :  { %51 = vadd.xlane.f32.xlu0 %v50_v22 }
  0x99   :  { %v48_v24 = vmul.f32 %v335_v20, %v335_v20  ;;  %v49_v25 = vmul.f32 %v337_v21, %v337_v21 }
  0x9b   :  { %v56_v26 = vsel %vm24_vm0, %v48_v24, 0.0  ;;  %v59_v27 = vsel %vm24_vm0, %v49_v25, 0.0 }
  0x9c   :  { %54 = vadd.xlane.f32.xlu0 %v53_v23  ;;  %57 = vadd.xlane.f32.xlu1 %v56_v26  ;;  %v116_v23 = vld [vmem:[%s444_s4] sm:$0x3] }
  0xa0   :  { %60 = vadd.xlane.f32.xlu1 %v59_v27 }
 0x125   :  { %v52_v53 = vpop.xlane.xlu0 %51 }
 0x126   :  { %v62_v54 = vmul.f32 0.015625, %v52_v53 }
 0x128   :  { %v66_v55 = vadd.f32 1e-05, %v62_v54 }
 0x129   :  { %v58_v56 = vpop.xlane.xlu1 %57  ;;  %v55_v57 = vpop.xlane.xlu0 %54 }
 0x12a   :  { %272 = vrsqrt.f32 %v66_v55  ;;  %v64_v58 = vmul.f32 0.015625, %v58_v56  ;;  %v63_v59 = vmul.f32 0.015625, %v55_v57 }
 0x12c   :  { %v68_v60 = vadd.f32 1e-05, %v64_v58  ;;  %v67_v61 = vadd.f32 1e-05, %v63_v59 }
 0x12d   :  { %v61_v62 = vpop.xlane.xlu1 %60 }
 0x12e   :  { %274 = vrsqrt.f32 %v68_v60  ;;  %v65_v63 = vmul.f32 0.015625, %v61_v62 }
 0x12f   :  { %276 = vrsqrt.f32 %v67_v61 }
 0x130   :  { %v69_v0 = vadd.f32 1e-05, %v65_v63 }
 0x132   :  { %278 = vrsqrt.f32 %v69_v0 }
 0x134   :  { %v273_v1 = vpop.eup %272 }
 0x135   :  { %v74_v3 = vmul.f32 %v273_v1, %v327_v12 }
 0x137   :  { %v85_v5 = vmul.f32 %v241_v2, %v74_v3 }
 0x138   :  { %v275_v6 = vpop.eup %274 }
 0x139   :  { %v277_v7 = vpop.eup %276  ;;  %v96_v8 = vadd.f32 %v242_v4, %v85_v5  ;;  %v76_v9 = vmul.f32 %v275_v6, %v335_v20 }
 0x13a   :  { %v75_v10 = vmul.f32 %v277_v7, %v329_v13  ;;  %v118_v13 = vlaneseq }
 0x13b   :  { %243 = vmatmul.mubr.msk.f32.vlgmr.msra.gmra.mrb[0].mxu0 %vm24_vm0, %v96_v8  ;;  %v87_v11 = vmul.f32 %v241_v2, %v76_v9 }
 0x13c   :  { %v279_v14 = vpop.eup %278  ;;  %210 = vmatprep.mubr.f32.mxu0 %v280_v50  ;;  %v86_v15 = vmul.f32 %v241_v2, %v75_v10  ;;  %v119_v20 = vshrl.u32 %v118_v13, 7 }
 0x13d   :  { %v98_v16 = vadd.f32 %v242_v4, %v87_v11  ;;  %v77_v12 = vmul.f32 %v279_v14, %v337_v21 }
 0x13e   :  { %v97_v17 = vadd.f32 %v242_v4, %v86_v15  ;;  %v120_v22 = vsub.s32 0, %v119_v20  ;;  %v124_v24 = vsub.s32 1, %v119_v20 }
 0x13f   :  { %245 = vmatmul.mubr.msk.f32.vlgmr.msra.gmra.mrb[0].mxu1 %vm24_vm0, %v98_v16  ;;  %v88_v18 = vmul.f32 %v241_v2, %v77_v12 }
 0x140   :  { %244 = vmatmul.mubr.msk.f32.gmra.mrb[2].mxu0 %vm24_vm0, %v97_v17  ;;  %222 = vmatprep.mubr.f32.mxu1 %v280_v50  ;;  %v121_v25 = vrot.slane %v116_v23, %v120_v22  ;;  %v125_v21 = vrot.slane %v116_v23, %v124_v24 }
 0x141   :  { %v99_v19 = vadd.f32 %v242_v4, %v88_v18 }
 0x143   :  { %246 = vmatmul.mubr.msk.f32.gmra.mrb[2].mxu1 %vm24_vm0, %v99_v19 }
 0x20e   :  { %v206_v26 = vpop.f32.mrb[0].mxu0 }
 0x20f   :  { %v207_v27 = vadd.f32 %v206_v26, %v121_v25  ;;  %v208_v28 = vpop.f32.mrb[1].mxu0 }
 0x210   :  { %v209_v29 = vadd.f32 %v208_v28, %v125_v21 }
 0x211   :  { %229 = vst [vmem:[%s445_s5] sm:$0xff] %v207_v27 }
 0x212   :  { %230 = vst.msk [vmem:[%s445_s5 + $0x8] sm:$0xff] %vm24_vm0, %v209_v29  ;;  %v218_v30 = vpop.f32.mrb[0].mxu1 }
 0x213   :  { %v212_v31 = vpop.f32.mrb[2].mxu0  ;;  %v219_v32 = vadd.f32 %v218_v30, %v121_v25  ;;  %v220_v33 = vpop.f32.mrb[1].mxu1 }
 0x214   :  { %v213_v34 = vadd.f32 %v212_v31, %v121_v25  ;;  %v214_v35 = vpop.f32.mrb[3].mxu0  ;;  %v221_v36 = vadd.f32 %v220_v33, %v125_v21 }
 0x215   :  { %233 = vst [vmem:[%s445_s5 + $0x20] sm:$0xff] %v219_v32  ;;  %v215_v37 = vadd.f32 %v214_v35, %v125_v21 }
 0x216   :  { %231 = vst [vmem:[%s445_s5 + $0x10] sm:$0xff] %v213_v34  ;;  %234 = vst.msk [vmem:[%s445_s5 + $0x28] sm:$0xff] %vm24_vm0, %v221_v36  ;;  %v224_v38 = vpop.f32.mrb[2].mxu1 }
 0x217   :  { %232 = vst.msk [vmem:[%s445_s5 + $0x18] sm:$0xff] %vm24_vm0, %v215_v37  ;;  %v225_v39 = vadd.f32 %v224_v38, %v121_v25  ;;  %v226_v40 = vpop.f32.mrb[3].mxu1 }
 0x218   :  { %v227_v41 = vadd.f32 %v226_v40, %v125_v21 }
 0x219   :  { %235 = vst [vmem:[%s445_s5 + $0x30] sm:$0xff] %v225_v39 }
 0x21a   :  { %236 = vst.msk [vmem:[%s445_s5 + $0x38] sm:$0xff] %vm24_vm0, %v227_v41 }

</bundles_post_ra>
